<compile_context>
chip_gen: v7x
topology: tpu7x:2x2x1
jax: 0.10.0
libtpu: 0.0.40
codegen_flags: <defaults>
</compile_context>

<pallas_src>
import functools

import jax
import jax.numpy as jnp
from jax import lax
from jax.experimental import pallas as pl
from jax.experimental.pallas import tpu as pltpu

EPS = 1e-5                       # PyTorch BatchNorm2d default eps
LANE = 128                       # channel dim padded to a multiple of the TPU lane width
VMEM_LIMIT_BYTES = 32 * 1024 * 1024


def _round_up(a, b):
    return (a + b - 1) // b * b


def _compiler_params(semantics):
    return pltpu.CompilerParams(dimension_semantics=semantics,
                                vmem_limit_bytes=VMEM_LIMIT_BYTES)


# ---------------- Pallas kernels ----------------

def _matmul_stats_kernel(p_ref, w_ref, y_ref, sum_ref, sq_ref):
    """Pass 1: Y_tile = P_tile @ W (bf16 in, f32 acc) + per-channel sum / sum-of-squares."""
    m = pl.program_id(0)

    @pl.when(m == 0)
    def _():
        sum_ref[...] = jnp.zeros_like(sum_ref)
        sq_ref[...] = jnp.zeros_like(sq_ref)

    y = jnp.dot(p_ref[...], w_ref[...], preferred_element_type=jnp.float32)
    y_ref[...] = y
    sum_ref[...] += jnp.sum(y, axis=0, keepdims=True)
    sq_ref[...] += jnp.sum(y * y, axis=0, keepdims=True)


def _bn_from_stats(y, s, q, g, b, inv_count):
    mean = s * inv_count
    var = q * inv_count - mean * mean           # one-pass E[y^2] - mean^2, all f32
    scale = g * lax.rsqrt(var + EPS)
    return y * scale + (b - mean * scale)


def _bn_act_kernel(y_ref, sum_ref, sq_ref, g_ref, b_ref, o_ref, *, inv_count, relu):
    """Pass 2: normalize + affine (+ ReLU)."""
    y = _bn_from_stats(y_ref[...], sum_ref[...], sq_ref[...], g_ref[...], b_ref[...], inv_count)
    if relu:
        y = jnp.maximum(y, 0.0)
    o_ref[...] = y.astype(o_ref.dtype)


def _bn2_add_relu_kernel(y2_ref, s2_ref, q2_ref, g2_ref, b2_ref,
                         ysc_ref, ssc_ref, qsc_ref, gsc_ref, bsc_ref,
                         o_ref, *, inv_count):
    """Fused epilogue (projection shortcut): BN(conv2) + BN(conv_sc) -> add -> ReLU."""
    r = _bn_from_stats(y2_ref[...], s2_ref[...], q2_ref[...], g2_ref[...], b2_ref[...], inv_count)
    s = _bn_from_stats(ysc_ref[...], ssc_ref[...], qsc_ref[...], gsc_ref[...], bsc_ref[...], inv_count)
    o_ref[...] = jnp.maximum(r + s, 0.0).astype(o_ref.dtype)


def _bn_add_relu_kernel(y2_ref, s2_ref, q2_ref, g2_ref, b2_ref, x_ref, o_ref, *, inv_count):
    """Fused epilogue (identity shortcut): BN(conv2) + x -> ReLU."""
    r = _bn_from_stats(y2_ref[...], s2_ref[...], q2_ref[...], g2_ref[...], b2_ref[...], inv_count)
    o_ref[...] = jnp.maximum(r + x_ref[...], 0.0).astype(o_ref.dtype)


# ---------------- pallas_call wrappers ----------------

def _tile_spec(tm, cp):
    return pl.BlockSpec((tm, cp), lambda m: (m, 0))


def _row_spec(cp):
    return pl.BlockSpec((1, cp), lambda m: (0, 0))


def matmul_stats(patches, w_mat, *, tm):
    mp_, k = patches.shape
    cp = w_mat.shape[1]
    bytes_accessed = (patches.size * patches.dtype.itemsize
                      + w_mat.size * w_mat.dtype.itemsize
                      + (mp_ + 2) * cp * 4)
    return pl.pallas_call(
        _matmul_stats_kernel,
        out_shape=(jax.ShapeDtypeStruct((mp_, cp), jnp.float32),
                   jax.ShapeDtypeStruct((1, cp), jnp.float32),
                   jax.ShapeDtypeStruct((1, cp), jnp.float32)),
        grid_spec=pltpu.PrefetchScalarGridSpec(
            num_scalar_prefetch=0,
            grid=(mp_ // tm,),
            in_specs=[pl.BlockSpec((tm, k), lambda m: (m, 0)),
                      pl.BlockSpec((k, cp), lambda m: (0, 0))],
            out_specs=[_tile_spec(tm, cp), _row_spec(cp), _row_spec(cp)]),
        # stats outputs accumulate across the M axis -> must be "arbitrary"
        compiler_params=_compiler_params(("arbitrary",)),
        cost_estimate=pl.CostEstimate(flops=2 * mp_ * k * cp, transcendentals=0,
                                      bytes_accessed=bytes_accessed),
    )(patches, w_mat)


def bn_act(y, s, q, g, b, *, count, relu, out_dtype, tm):
    mp_, cp = y.shape
    kernel = functools.partial(_bn_act_kernel, inv_count=1.0 / count, relu=relu)
    return pl.pallas_call(
        kernel,
        out_shape=jax.ShapeDtypeStruct((mp_, cp), out_dtype),
        grid_spec=pltpu.PrefetchScalarGridSpec(
            num_scalar_prefetch=0,
            grid=(mp_ // tm,),
            in_specs=[_tile_spec(tm, cp)] + [_row_spec(cp) for _ in range(4)],
            out_specs=_tile_spec(tm, cp)),
        compiler_params=_compiler_params(("parallel",)),
    )(y, s, q, g, b)


def bn2_add_relu(y2, s2, q2, g2, b2, ysc, ssc, qsc, gsc, bsc, *, count, tm):
    mp_, cp = y2.shape
    kernel = functools.partial(_bn2_add_relu_kernel, inv_count=1.0 / count)
    return pl.pallas_call(
        kernel,
        out_shape=jax.ShapeDtypeStruct((mp_, cp), jnp.float32),
        grid_spec=pltpu.PrefetchScalarGridSpec(
            num_scalar_prefetch=0,
            grid=(mp_ // tm,),
            in_specs=([_tile_spec(tm, cp)] + [_row_spec(cp) for _ in range(4)]
                      + [_tile_spec(tm, cp)] + [_row_spec(cp) for _ in range(4)]),
            out_specs=_tile_spec(tm, cp)),
        compiler_params=_compiler_params(("parallel",)),
    )(y2, s2, q2, g2, b2, ysc, ssc, qsc, gsc, bsc)


def bn_add_relu(y2, s2, q2, g2, b2, x_sc, *, count, tm):
    mp_, cp = y2.shape
    kernel = functools.partial(_bn_add_relu_kernel, inv_count=1.0 / count)
    return pl.pallas_call(
        kernel,
        out_shape=jax.ShapeDtypeStruct((mp_, cp), jnp.float32),
        grid_spec=pltpu.PrefetchScalarGridSpec(
            num_scalar_prefetch=0,
            grid=(mp_ // tm,),
            in_specs=([_tile_spec(tm, cp)] + [_row_spec(cp) for _ in range(4)]
                      + [_tile_spec(tm, cp)]),
            out_specs=_tile_spec(tm, cp)),
        compiler_params=_compiler_params(("parallel",)),
    )(y2, s2, q2, g2, b2, x_sc)


# ---------------- plain-JAX glue (im2col / param layout) ----------------

def im2col(x_nhwc, ksize, stride, pad):
    # TODO(synk): fold the 9 taps into the kernel's K loop (manual/strided DMA) instead of
    # materializing the 9x-inflated patches tensor in HBM.
    n, h, w, c = x_nhwc.shape
    xp = jnp.pad(x_nhwc, ((0, 0), (pad, pad), (pad, pad), (0, 0)))
    ho = (h + 2 * pad - ksize) // stride + 1
    wo = (w + 2 * pad - ksize) // stride + 1
    cols = []
    for dh in range(ksize):
        for dw in range(ksize):
            cols.append(xp[:, dh:dh + stride * ho:stride, dw:dw + stride * wo:stride, :])
    patches = jnp.concatenate(cols, axis=-1)                 # (N, Ho, Wo, kh*kw*C)
    return patches.reshape(n * ho * wo, ksize * ksize * c), (n, ho, wo)


def _pad_rows(a, mp_):
    if a.shape[0] == mp_:
        return a
    return jnp.pad(a, ((0, mp_ - a.shape[0]), (0, 0)))


def _weight_matrix(w_oihw, cp):
    # PyTorch (C_out, C_in, kh, kw) -> (kh*kw*C_in, C_out padded to cp), matching im2col order.
    o, i, kh, kw = w_oihw.shape
    m = jnp.transpose(w_oihw, (2, 3, 1, 0)).reshape(kh * kw * i, o)
    return jnp.pad(m, ((0, 0), (0, cp - o))).astype(jnp.bfloat16)


def _pad_row(v, cp):
    return jnp.pad(v.astype(jnp.float32), (0, cp - v.shape[0])).reshape(1, cp)


def prepare_block_params(params):
    """Hoisted out of the per-forward path: bf16 weight matrices + lane-padded BN affine rows."""
    cout = params["w1"].shape[0]
    cp = _round_up(cout, LANE)
    prep = {
        "w1": _weight_matrix(params["w1"], cp), "w2": _weight_matrix(params["w2"], cp),
        "g1": _pad_row(params["g1"], cp), "b1": _pad_row(params["b1"], cp),
        "g2": _pad_row(params["g2"], cp), "b2": _pad_row(params["b2"], cp),
    }
    if "w_sc" in params:
        prep["w_sc"] = _weight_matrix(params["w_sc"], cp)
        prep["g_sc"] = _pad_row(params["g_sc"], cp)
        prep["b_sc"] = _pad_row(params["b_sc"], cp)
    return prep


def resnet_basic_block(x_nchw, prep, *, stride, out_channels, tm=512):
    x = jnp.transpose(x_nchw, (0, 2, 3, 1)).astype(jnp.float32)   # NCHW -> NHWC
    n, h, w, cin = x.shape
    cp = prep["w1"].shape[1]
    cout = out_channels

    x_bf = x.astype(jnp.bfloat16)                                 # bf16 MXU inputs

    # residual conv1 (3x3, stride) + BN + ReLU
    p1, (n_, ho, wo) = im2col(x_bf, 3, stride, 1)
    m = n_ * ho * wo
    tm = min(tm, _round_up(m, 8))
    mp_ = _round_up(m, tm)                        # zero-row padding keeps BN sums exact
    y1, s1, q1 = matmul_stats(_pad_rows(p1, mp_), prep["w1"], tm=tm)
    r1 = bn_act(y1, s1, q1, prep["g1"], prep["b1"], count=m,
                relu=True, out_dtype=jnp.bfloat16, tm=tm)
    r1 = r1[:m, :cout].reshape(n_, ho, wo, cout)

    # residual conv2 (3x3, stride 1) + BN (epilogue fused with shortcut below)
    p2, _ = im2col(r1, 3, 1, 1)
    y2, s2, q2 = matmul_stats(_pad_rows(p2, mp_), prep["w2"], tm=tm)

    if "w_sc" in prep:
        # projection shortcut: conv1x1(stride) + BN, fused with residual add + ReLU
        # TODO(synk): feed the strided spatial subsample via index_map/manual DMA instead of
        # materializing it in HBM here.
        xs = x_bf[:, ::stride, ::stride, :].reshape(m, cin)
        ysc, ssc, qsc = matmul_stats(_pad_rows(xs, mp_), prep["w_sc"], tm=tm)
        out = bn2_add_relu(y2, s2, q2, prep["g2"], prep["b2"],
                           ysc, ssc, qsc, prep["g_sc"], prep["b_sc"],
                           count=m, tm=tm)
    else:
        # identity shortcut (f32), fused with BN(conv2) + add + ReLU
        x_sc = jnp.pad(x.reshape(m, cin), ((0, mp_ - m), (0, cp - cin)))
        out = bn_add_relu(y2, s2, q2, prep["g2"], prep["b2"], x_sc, count=m, tm=tm)

    out = out[:m, :cout].reshape(n_, ho, wo, cout)
    return jnp.transpose(out, (0, 3, 1, 2))                       # back to NCHW

# TODO(synk): training-mode BatchNorm running-stat buffer updates are omitted
# (they do not affect the forward output).


# ---------------- pure-JAX reference (correctness check) ----------------

def _ref_bn(x, g, b):
    m = jnp.mean(x, axis=(0, 2, 3), keepdims=True)
    v = jnp.mean((x - m) ** 2, axis=(0, 2, 3), keepdims=True)
    return (x - m) * lax.rsqrt(v + EPS) * g.reshape(1, -1, 1, 1) + b.reshape(1, -1, 1, 1)


def ref_block(x, params, stride):
    def conv(x, w, s, pad):
        return lax.conv_general_dilated(
            x, w, (s, s), ((pad, pad), (pad, pad)),
            dimension_numbers=("NCHW", "OIHW", "NCHW"),
            precision=lax.Precision.HIGHEST)
    in_c = x.shape[1]
    out_c = params["w1"].shape[0]
    y = jnp.maximum(_ref_bn(conv(x, params["w1"], stride, 1), params["g1"], params["b1"]), 0.0)
    y = _ref_bn(conv(y, params["w2"], 1, 1), params["g2"], params["b2"])
    if stride != 1 or in_c != out_c:
        s = _ref_bn(conv(x, params["w_sc"], stride, 0), params["g_sc"], params["b_sc"])
    else:
        s = x
    return jnp.maximum(y + s, 0.0)


# ---------------- main ----------------

if __name__ == "__main__":
    key = jax.random.PRNGKey(0)
    k_x, k_w1, k_w2, k_wsc, k_x2, k_w1b, k_w2b = jax.random.split(key, 7)

    # ---- test 1: projection-shortcut block (stride=2, 4 -> 8 channels) ----
    n, cin, h, w = 2, 4, 16, 16
    cout, stride = 8, 2
    x = jax.random.normal(k_x, (n, cin, h, w), dtype=jnp.float32)
    params = {
        "w1": jax.random.normal(k_w1, (cout, cin, 3, 3), dtype=jnp.float32) * 0.1,
        "w2": jax.random.normal(k_w2, (cout, cout, 3, 3), dtype=jnp.float32) * 0.1,
        "w_sc": jax.random.normal(k_wsc, (cout, cin, 1, 1), dtype=jnp.float32) * 0.1,
        "g1": jnp.ones((cout,), jnp.float32), "b1": jnp.zeros((cout,), jnp.float32),
        "g2": jnp.ones((cout,), jnp.float32), "b2": jnp.zeros((cout,), jnp.float32),
        "g_sc": jnp.ones((cout,), jnp.float32), "b_sc": jnp.zeros((cout,), jnp.float32),
    }
    prep = prepare_block_params(params)
    fwd = jax.jit(functools.partial(resnet_basic_block, stride=stride, out_channels=cout, tm=64))
    out = jax.block_until_ready(fwd(x, prep))
    ref = jax.block_until_ready(ref_block(x, params, stride))
    assert out.shape == (n, cout, h // stride, w // stride), out.shape
    # bf16 MXU inputs (f32 accumulation / f32 BN) vs. an f32 reference -> widened tolerance.
    assert jnp.allclose(out, ref, atol=5e-2, rtol=5e-2), float(jnp.max(jnp.abs(out - ref)))

    # ---- test 2: identity-shortcut block (stride=1, 8 -> 8 channels) ----
    c2 = 8
    x2 = jax.random.normal(k_x2, (n, c2, h, w), dtype=jnp.float32)
    params2 = {
        "w1": jax.random.normal(k_w1b, (c2, c2, 3, 3), dtype=jnp.float32) * 0.1,
        "w2": jax.random.normal(k_w2b, (c2, c2, 3, 3), dtype=jnp.float32) * 0.1,
        "g1": jnp.ones((c2,), jnp.float32), "b1": jnp.zeros((c2,), jnp.float32),
        "g2": jnp.ones((c2,), jnp.float32), "b2": jnp.zeros((c2,), jnp.float32),
    }
    prep2 = prepare_block_params(params2)
    fwd2 = jax.jit(functools.partial(resnet_basic_block, stride=1, out_channels=c2, tm=64))
    out2 = jax.block_until_ready(fwd2(x2, prep2))
    ref2 = jax.block_until_ready(ref_block(x2, params2, 1))
    assert out2.shape == (n, c2, h, w), out2.shape
    assert jnp.allclose(out2, ref2, atol=5e-2, rtol=5e-2), float(jnp.max(jnp.abs(out2 - ref2)))

    print("KERNEL_OK")
</pallas_src>

<mosaic_0001>
module attributes {stable_mosaic.version = 11 : i64} {
  func.func @_matmul_stats_kernel(%arg0: i32, %arg1: memref<64x36xbf16, #tpu.memory_space<vmem>>, %arg2: memref<36x128xbf16, #tpu.memory_space<vmem>>, %arg3: memref<64x128xf32, #tpu.memory_space<vmem>>, %arg4: memref<1x128xf32, #tpu.memory_space<vmem>>, %arg5: memref<1x128xf32, #tpu.memory_space<vmem>>) attributes {dimension_semantics = [#tpu.dimension_semantics<arbitrary>], iteration_bounds = array<i64: 2>, scalar_prefetch = 0 : i64, scratch_operands = 0 : i64, tpu.core_type = #tpu.core_type<tc>, window_params = [{transform_indices = @transform_0, window_bounds = array<i64: 64, 36>}, {pipeline_mode = #tpu.pipeline_mode<synchronous>, transform_indices = @transform_1, window_bounds = array<i64: 36, 128>}, {transform_indices = @transform_2, window_bounds = array<i64: 64, 128>}, {pipeline_mode = #tpu.pipeline_mode<synchronous>, transform_indices = @transform_3, window_bounds = array<i64: 1, 128>}, {pipeline_mode = #tpu.pipeline_mode<synchronous>, transform_indices = @transform_4, window_bounds = array<i64: 1, 128>}]} {
    %c0_i32 = arith.constant 0 : i32
    %0 = arith.cmpi eq, %arg0, %c0_i32 : i32
    %1 = arith.extui %0 : i1 to i32
    %c0_i32_0 = arith.constant 0 : i32
    %2 = arith.cmpi ne, %1, %c0_i32_0 : i32
    scf.if %2 {
      %cst_16 = arith.constant 0.000000e+00 : f32
      %18 = vector.broadcast %cst_16 : f32 to vector<1x128xf32>
      %c0_17 = arith.constant 0 : index
      %c0_18 = arith.constant 0 : index
      %19 = vector.load %arg4[%c0_17, %c0_18] : memref<1x128xf32, #tpu.memory_space<vmem>>, vector<1x128xf32>
      tpu.vector_store %arg4[%c0_17, %c0_18], %18 {strides = array<i32>} : memref<1x128xf32, #tpu.memory_space<vmem>>, vector<1x128xf32>,
      %cst_19 = arith.constant 0.000000e+00 : f32
      %20 = vector.broadcast %cst_19 : f32 to vector<1x128xf32>
      %c0_20 = arith.constant 0 : index
      %c0_21 = arith.constant 0 : index
      %21 = vector.load %arg5[%c0_20, %c0_21] : memref<1x128xf32, #tpu.memory_space<vmem>>, vector<1x128xf32>
      tpu.vector_store %arg5[%c0_20, %c0_21], %20 {strides = array<i32>} : memref<1x128xf32, #tpu.memory_space<vmem>>, vector<1x128xf32>,
    } else {
    }
    %c0 = arith.constant 0 : index
    %c0_1 = arith.constant 0 : index
    %3 = vector.load %arg1[%c0, %c0_1] : memref<64x36xbf16, #tpu.memory_space<vmem>>, vector<64x36xbf16>
    %c0_2 = arith.constant 0 : index
    %c0_3 = arith.constant 0 : index
    %4 = vector.load %arg2[%c0_2, %c0_3] : memref<36x128xbf16, #tpu.memory_space<vmem>>, vector<36x128xbf16>
    %cst = arith.constant dense<0.000000e+00> : vector<64x128xf32>
    %5 = tpu.matmul %3, %4, %cst {dimension_numbers = #tpu.dot_dimension_numbers<[1], [0], [0], [1], [0, 0, 1, 1], [], []>} : vector<64x36xbf16>, vector<36x128xbf16>, vector<64x128xf32> -> vector<64x128xf32>
    %c0_4 = arith.constant 0 : index
    %c0_5 = arith.constant 0 : index
    %6 = vector.load %arg3[%c0_4, %c0_5] : memref<64x128xf32, #tpu.memory_space<vmem>>, vector<64x128xf32>
    tpu.vector_store %arg3[%c0_4, %c0_5], %5 {strides = array<i32>} : memref<64x128xf32, #tpu.memory_space<vmem>>, vector<64x128xf32>,
    %c0_6 = arith.constant 0 : index
    %c0_7 = arith.constant 0 : index
    %7 = vector.load %arg4[%c0_6, %c0_7] : memref<1x128xf32, #tpu.memory_space<vmem>>, vector<1x128xf32>
    %cst_8 = arith.constant dense<0.000000e+00> : vector<128xf32>
    %8 = vector.multi_reduction <add>, %5, %cst_8 [0] : vector<64x128xf32> to vector<128xf32>
    %9 = vector.shape_cast %8 : vector<128xf32> to vector<1x128xf32>
    %10 = arith.addf %7, %9 : vector<1x128xf32>
    %c0_9 = arith.constant 0 : index
    %c0_10 = arith.constant 0 : index
    %11 = vector.load %arg4[%c0_9, %c0_10] : memref<1x128xf32, #tpu.memory_space<vmem>>, vector<1x128xf32>
    tpu.vector_store %arg4[%c0_9, %c0_10], %10 {strides = array<i32>} : memref<1x128xf32, #tpu.memory_space<vmem>>, vector<1x128xf32>,
    %c0_11 = arith.constant 0 : index
    %c0_12 = arith.constant 0 : index
    %12 = vector.load %arg5[%c0_11, %c0_12] : memref<1x128xf32, #tpu.memory_space<vmem>>, vector<1x128xf32>
    %13 = arith.mulf %5, %5 : vector<64x128xf32>
    %cst_13 = arith.constant dense<0.000000e+00> : vector<128xf32>
    %14 = vector.multi_reduction <add>, %13, %cst_13 [0] : vector<64x128xf32> to vector<128xf32>
    %15 = vector.shape_cast %14 : vector<128xf32> to vector<1x128xf32>
    %16 = arith.addf %12, %15 : vector<1x128xf32>
    %c0_14 = arith.constant 0 : index
    %c0_15 = arith.constant 0 : index
    %17 = vector.load %arg5[%c0_14, %c0_15] : memref<1x128xf32, #tpu.memory_space<vmem>>, vector<1x128xf32>
    tpu.vector_store %arg5[%c0_14, %c0_15], %16 {strides = array<i32>} : memref<1x128xf32, #tpu.memory_space<vmem>>, vector<1x128xf32>,
    return
  }
  func.func @transform_0(%arg0: i32) -> (i32, i32) {
    %c0_i32 = arith.constant 0 : i32
    %c0_i32_0 = arith.constant 0 : i32
    return %arg0, %c0_i32 : i32, i32
  }
  func.func @transform_1(%arg0: i32) -> (i32, i32) {
    %c0_i32 = arith.constant 0 : i32
    %c0_i32_0 = arith.constant 0 : i32
    %c0_i32_1 = arith.constant 0 : i32
    return %c0_i32, %c0_i32_0 : i32, i32
  }
  func.func @transform_2(%arg0: i32) -> (i32, i32) {
    %c0_i32 = arith.constant 0 : i32
    %c0_i32_0 = arith.constant 0 : i32
    return %arg0, %c0_i32 : i32, i32
  }
  func.func @transform_3(%arg0: i32) -> (i32, i32) {
    %c0_i32 = arith.constant 0 : i32
    %c0_i32_0 = arith.constant 0 : i32
    %c0_i32_1 = arith.constant 0 : i32
    return %c0_i32, %c0_i32_0 : i32, i32
  }
  func.func @transform_4(%arg0: i32) -> (i32, i32) {
    %c0_i32 = arith.constant 0 : i32
    %c0_i32_0 = arith.constant 0 : i32
    %c0_i32_1 = arith.constant 0 : i32
    return %c0_i32, %c0_i32_0 : i32, i32
  }
}

module attributes {stable_mosaic.version = 11 : i64} {
  func.func @_bn_act_kernel(%arg0: i32, %arg1: memref<64x128xf32, #tpu.memory_space<vmem>>, %arg2: memref<1x128xf32, #tpu.memory_space<vmem>>, %arg3: memref<1x128xf32, #tpu.memory_space<vmem>>, %arg4: memref<1x128xf32, #tpu.memory_space<vmem>>, %arg5: memref<1x128xf32, #tpu.memory_space<vmem>>, %arg6: memref<64x128xbf16, #tpu.memory_space<vmem>>) attributes {dimension_semantics = [#tpu.dimension_semantics<parallel>], iteration_bounds = array<i64: 2>, scalar_prefetch = 0 : i64, scratch_operands = 0 : i64, tpu.core_type = #tpu.core_type<tc>, window_params = [{transform_indices = @transform_0, window_bounds = array<i64: 64, 128>}, {pipeline_mode = #tpu.pipeline_mode<synchronous>, transform_indices = @transform_1, window_bounds = array<i64: 1, 128>}, {pipeline_mode = #tpu.pipeline_mode<synchronous>, transform_indices = @transform_2, window_bounds = array<i64: 1, 128>}, {pipeline_mode = #tpu.pipeline_mode<synchronous>, transform_indices = @transform_3, window_bounds = array<i64: 1, 128>}, {pipeline_mode = #tpu.pipeline_mode<synchronous>, transform_indices = @transform_4, window_bounds = array<i64: 1, 128>}, {transform_indices = @transform_5, window_bounds = array<i64: 64, 128>}]} {
    %c0 = arith.constant 0 : index
    %c0_0 = arith.constant 0 : index
    %0 = vector.load %arg1[%c0, %c0_0] : memref<64x128xf32, #tpu.memory_space<vmem>>, vector<64x128xf32>
    %c0_1 = arith.constant 0 : index
    %c0_2 = arith.constant 0 : index
    %1 = vector.load %arg2[%c0_1, %c0_2] : memref<1x128xf32, #tpu.memory_space<vmem>>, vector<1x128xf32>
    %c0_3 = arith.constant 0 : index
    %c0_4 = arith.constant 0 : index
    %2 = vector.load %arg3[%c0_3, %c0_4] : memref<1x128xf32, #tpu.memory_space<vmem>>, vector<1x128xf32>
    %c0_5 = arith.constant 0 : index
    %c0_6 = arith.constant 0 : index
    %3 = vector.load %arg4[%c0_5, %c0_6] : memref<1x128xf32, #tpu.memory_space<vmem>>, vector<1x128xf32>
    %c0_7 = arith.constant 0 : index
    %c0_8 = arith.constant 0 : index
    %4 = vector.load %arg5[%c0_7, %c0_8] : memref<1x128xf32, #tpu.memory_space<vmem>>, vector<1x128xf32>
    %cst = arith.constant 7.812500e-03 : f32
    %5 = vector.broadcast %cst : f32 to vector<1x128xf32>
    %6 = arith.mulf %1, %5 : vector<1x128xf32>
    %cst_9 = arith.constant 7.812500e-03 : f32
    %7 = vector.broadcast %cst_9 : f32 to vector<1x128xf32>
    %8 = arith.mulf %2, %7 : vector<1x128xf32>
    %9 = arith.mulf %6, %6 : vector<1x128xf32>
    %10 = arith.subf %8, %9 : vector<1x128xf32>
    %cst_10 = arith.constant 9.99999974E-6 : f32
    %11 = vector.broadcast %cst_10 : f32 to vector<1x128xf32>
    %12 = arith.addf %10, %11 : vector<1x128xf32>
    %13 = math.rsqrt %12 : vector<1x128xf32>
    %14 = arith.mulf %3, %13 : vector<1x128xf32>
    %15 = vector.broadcast %14 : vector<1x128xf32> to vector<64x128xf32>
    %16 = arith.mulf %0, %15 : vector<64x128xf32>
    %17 = arith.mulf %6, %14 : vector<1x128xf32>
    %18 = arith.subf %4, %17 : vector<1x128xf32>
    %19 = vector.broadcast %18 : vector<1x128xf32> to vector<64x128xf32>
    %20 = arith.addf %16, %19 : vector<64x128xf32>
    %cst_11 = arith.constant 0.000000e+00 : f32
    %21 = vector.broadcast %cst_11 : f32 to vector<64x128xf32>
    %22 = arith.maximumf %20, %21 : vector<64x128xf32>
    %23 = arith.truncf %22 : vector<64x128xf32> to vector<64x128xbf16>
    %c0_12 = arith.constant 0 : index
    %c0_13 = arith.constant 0 : index
    %24 = vector.load %arg6[%c0_12, %c0_13] : memref<64x128xbf16, #tpu.memory_space<vmem>>, vector<64x128xbf16>
    tpu.vector_store %arg6[%c0_12, %c0_13], %23 {strides = array<i32>} : memref<64x128xbf16, #tpu.memory_space<vmem>>, vector<64x128xbf16>,
    return
  }
  func.func @transform_0(%arg0: i32) -> (i32, i32) {
    %c0_i32 = arith.constant 0 : i32
    %c0_i32_0 = arith.constant 0 : i32
    return %arg0, %c0_i32 : i32, i32
  }
  func.func @transform_1(%arg0: i32) -> (i32, i32) {
    %c0_i32 = arith.constant 0 : i32
    %c0_i32_0 = arith.constant 0 : i32
    %c0_i32_1 = arith.constant 0 : i32
    return %c0_i32, %c0_i32_0 : i32, i32
  }
  func.func @transform_2(%arg0: i32) -> (i32, i32) {
    %c0_i32 = arith.constant 0 : i32
    %c0_i32_0 = arith.constant 0 : i32
    %c0_i32_1 = arith.constant 0 : i32
    return %c0_i32, %c0_i32_0 : i32, i32
  }
  func.func @transform_3(%arg0: i32) -> (i32, i32) {
    %c0_i32 = arith.constant 0 : i32
    %c0_i32_0 = arith.constant 0 : i32
    %c0_i32_1 = arith.constant 0 : i32
    return %c0_i32, %c0_i32_0 : i32, i32
  }
  func.func @transform_4(%arg0: i32) -> (i32, i32) {
    %c0_i32 = arith.constant 0 : i32
    %c0_i32_0 = arith.constant 0 : i32
    %c0_i32_1 = arith.constant 0 : i32
    return %c0_i32, %c0_i32_0 : i32, i32
  }
  func.func @transform_5(%arg0: i32) -> (i32, i32) {
    %c0_i32 = arith.constant 0 : i32
    %c0_i32_0 = arith.constant 0 : i32
    return %arg0, %c0_i32 : i32, i32
  }
}

module attributes {stable_mosaic.version = 11 : i64} {
  func.func @_matmul_stats_kernel(%arg0: i32, %arg1: memref<64x72xbf16, #tpu.memory_space<vmem>>, %arg2: memref<72x128xbf16, #tpu.memory_space<vmem>>, %arg3: memref<64x128xf32, #tpu.memory_space<vmem>>, %arg4: memref<1x128xf32, #tpu.memory_space<vmem>>, %arg5: memref<1x128xf32, #tpu.memory_space<vmem>>) attributes {dimension_semantics = [#tpu.dimension_semantics<arbitrary>], iteration_bounds = array<i64: 2>, scalar_prefetch = 0 : i64, scratch_operands = 0 : i64, tpu.core_type = #tpu.core_type<tc>, window_params = [{transform_indices = @transform_0, window_bounds = array<i64: 64, 72>}, {pipeline_mode = #tpu.pipeline_mode<synchronous>, transform_indices = @transform_1, window_bounds = array<i64: 72, 128>}, {transform_indices = @transform_2, window_bounds = array<i64: 64, 128>}, {pipeline_mode = #tpu.pipeline_mode<synchronous>, transform_indices = @transform_3, window_bounds = array<i64: 1, 128>}, {pipeline_mode = #tpu.pipeline_mode<synchronous>, transform_indices = @transform_4, window_bounds = array<i64: 1, 128>}]} {
    %c0_i32 = arith.constant 0 : i32
    %0 = arith.cmpi eq, %arg0, %c0_i32 : i32
    %1 = arith.extui %0 : i1 to i32
    %c0_i32_0 = arith.constant 0 : i32
    %2 = arith.cmpi ne, %1, %c0_i32_0 : i32
    scf.if %2 {
      %cst_16 = arith.constant 0.000000e+00 : f32
      %18 = vector.broadcast %cst_16 : f32 to vector<1x128xf32>
      %c0_17 = arith.constant 0 : index
      %c0_18 = arith.constant 0 : index
      %19 = vector.load %arg4[%c0_17, %c0_18] : memref<1x128xf32, #tpu.memory_space<vmem>>, vector<1x128xf32>
      tpu.vector_store %arg4[%c0_17, %c0_18], %18 {strides = array<i32>} : memref<1x128xf32, #tpu.memory_space<vmem>>, vector<1x128xf32>,
      %cst_19 = arith.constant 0.000000e+00 : f32
      %20 = vector.broadcast %cst_19 : f32 to vector<1x128xf32>
      %c0_20 = arith.constant 0 : index
      %c0_21 = arith.constant 0 : index
      %21 = vector.load %arg5[%c0_20, %c0_21] : memref<1x128xf32, #tpu.memory_space<vmem>>, vector<1x128xf32>
      tpu.vector_store %arg5[%c0_20, %c0_21], %20 {strides = array<i32>} : memref<1x128xf32, #tpu.memory_space<vmem>>, vector<1x128xf32>,
    } else {
    }
    %c0 = arith.constant 0 : index
    %c0_1 = arith.constant 0 : index
    %3 = vector.load %arg1[%c0, %c0_1] : memref<64x72xbf16, #tpu.memory_space<vmem>>, vector<64x72xbf16>
    %c0_2 = arith.constant 0 : index
    %c0_3 = arith.constant 0 : index
    %4 = vector.load %arg2[%c0_2, %c0_3] : memref<72x128xbf16, #tpu.memory_space<vmem>>, vector<72x128xbf16>
    %cst = arith.constant dense<0.000000e+00> : vector<64x128xf32>
    %5 = tpu.matmul %3, %4, %cst {dimension_numbers = #tpu.dot_dimension_numbers<[1], [0], [0], [1], [0, 0, 1, 1], [], []>} : vector<64x72xbf16>, vector<72x128xbf16>, vector<64x128xf32> -> vector<64x128xf32>
    %c0_4 = arith.constant 0 : index
    %c0_5 = arith.constant 0 : index
    %6 = vector.load %arg3[%c0_4, %c0_5] : memref<64x128xf32, #tpu.memory_space<vmem>>, vector<64x128xf32>
    tpu.vector_store %arg3[%c0_4, %c0_5], %5 {strides = array<i32>} : memref<64x128xf32, #tpu.memory_space<vmem>>, vector<64x128xf32>,
    %c0_6 = arith.constant 0 : index
    %c0_7 = arith.constant 0 : index
    %7 = vector.load %arg4[%c0_6, %c0_7] : memref<1x128xf32, #tpu.memory_space<vmem>>, vector<1x128xf32>
    %cst_8 = arith.constant dense<0.000000e+00> : vector<128xf32>
    %8 = vector.multi_reduction <add>, %5, %cst_8 [0] : vector<64x128xf32> to vector<128xf32>
    %9 = vector.shape_cast %8 : vector<128xf32> to vector<1x128xf32>
    %10 = arith.addf %7, %9 : vector<1x128xf32>
    %c0_9 = arith.constant 0 : index
    %c0_10 = arith.constant 0 : index
    %11 = vector.load %arg4[%c0_9, %c0_10] : memref<1x128xf32, #tpu.memory_space<vmem>>, vector<1x128xf32>
    tpu.vector_store %arg4[%c0_9, %c0_10], %10 {strides = array<i32>} : memref<1x128xf32, #tpu.memory_space<vmem>>, vector<1x128xf32>,
    %c0_11 = arith.constant 0 : index
    %c0_12 = arith.constant 0 : index
    %12 = vector.load %arg5[%c0_11, %c0_12] : memref<1x128xf32, #tpu.memory_space<vmem>>, vector<1x128xf32>
    %13 = arith.mulf %5, %5 : vector<64x128xf32>
    %cst_13 = arith.constant dense<0.000000e+00> : vector<128xf32>
    %14 = vector.multi_reduction <add>, %13, %cst_13 [0] : vector<64x128xf32> to vector<128xf32>
    %15 = vector.shape_cast %14 : vector<128xf32> to vector<1x128xf32>
    %16 = arith.addf %12, %15 : vector<1x128xf32>
    %c0_14 = arith.constant 0 : index
    %c0_15 = arith.constant 0 : index
    %17 = vector.load %arg5[%c0_14, %c0_15] : memref<1x128xf32, #tpu.memory_space<vmem>>, vector<1x128xf32>
    tpu.vector_store %arg5[%c0_14, %c0_15], %16 {strides = array<i32>} : memref<1x128xf32, #tpu.memory_space<vmem>>, vector<1x128xf32>,
    return
  }
  func.func @transform_0(%arg0: i32) -> (i32, i32) {
    %c0_i32 = arith.constant 0 : i32
    %c0_i32_0 = arith.constant 0 : i32
    return %arg0, %c0_i32 : i32, i32
  }
  func.func @transform_1(%arg0: i32) -> (i32, i32) {
    %c0_i32 = arith.constant 0 : i32
    %c0_i32_0 = arith.constant 0 : i32
    %c0_i32_1 = arith.constant 0 : i32
    return %c0_i32, %c0_i32_0 : i32, i32
  }
  func.func @transform_2(%arg0: i32) -> (i32, i32) {
    %c0_i32 = arith.constant 0 : i32
    %c0_i32_0 = arith.constant 0 : i32
    return %arg0, %c0_i32 : i32, i32
  }
  func.func @transform_3(%arg0: i32) -> (i32, i32) {
    %c0_i32 = arith.constant 0 : i32
    %c0_i32_0 = arith.constant 0 : i32
    %c0_i32_1 = arith.constant 0 : i32
    return %c0_i32, %c0_i32_0 : i32, i32
  }
  func.func @transform_4(%arg0: i32) -> (i32, i32) {
    %c0_i32 = arith.constant 0 : i32
    %c0_i32_0 = arith.constant 0 : i32
    %c0_i32_1 = arith.constant 0 : i32
    return %c0_i32, %c0_i32_0 : i32, i32
  }
}

module attributes {stable_mosaic.version = 11 : i64} {
  func.func @_matmul_stats_kernel(%arg0: i32, %arg1: memref<64x4xbf16, #tpu.memory_space<vmem>>, %arg2: memref<4x128xbf16, #tpu.memory_space<vmem>>, %arg3: memref<64x128xf32, #tpu.memory_space<vmem>>, %arg4: memref<1x128xf32, #tpu.memory_space<vmem>>, %arg5: memref<1x128xf32, #tpu.memory_space<vmem>>) attributes {dimension_semantics = [#tpu.dimension_semantics<arbitrary>], iteration_bounds = array<i64: 2>, scalar_prefetch = 0 : i64, scratch_operands = 0 : i64, tpu.core_type = #tpu.core_type<tc>, window_params = [{transform_indices = @transform_0, window_bounds = array<i64: 64, 4>}, {pipeline_mode = #tpu.pipeline_mode<synchronous>, transform_indices = @transform_1, window_bounds = array<i64: 4, 128>}, {transform_indices = @transform_2, window_bounds = array<i64: 64, 128>}, {pipeline_mode = #tpu.pipeline_mode<synchronous>, transform_indices = @transform_3, window_bounds = array<i64: 1, 128>}, {pipeline_mode = #tpu.pipeline_mode<synchronous>, transform_indices = @transform_4, window_bounds = array<i64: 1, 128>}]} {
    %c0_i32 = arith.constant 0 : i32
    %0 = arith.cmpi eq, %arg0, %c0_i32 : i32
    %1 = arith.extui %0 : i1 to i32
    %c0_i32_0 = arith.constant 0 : i32
    %2 = arith.cmpi ne, %1, %c0_i32_0 : i32
    scf.if %2 {
      %cst_16 = arith.constant 0.000000e+00 : f32
      %18 = vector.broadcast %cst_16 : f32 to vector<1x128xf32>
      %c0_17 = arith.constant 0 : index
      %c0_18 = arith.constant 0 : index
      %19 = vector.load %arg4[%c0_17, %c0_18] : memref<1x128xf32, #tpu.memory_space<vmem>>, vector<1x128xf32>
      tpu.vector_store %arg4[%c0_17, %c0_18], %18 {strides = array<i32>} : memref<1x128xf32, #tpu.memory_space<vmem>>, vector<1x128xf32>,
      %cst_19 = arith.constant 0.000000e+00 : f32
      %20 = vector.broadcast %cst_19 : f32 to vector<1x128xf32>
      %c0_20 = arith.constant 0 : index
      %c0_21 = arith.constant 0 : index
      %21 = vector.load %arg5[%c0_20, %c0_21] : memref<1x128xf32, #tpu.memory_space<vmem>>, vector<1x128xf32>
      tpu.vector_store %arg5[%c0_20, %c0_21], %20 {strides = array<i32>} : memref<1x128xf32, #tpu.memory_space<vmem>>, vector<1x128xf32>,
    } else {
    }
    %c0 = arith.constant 0 : index
    %c0_1 = arith.constant 0 : index
    %3 = vector.load %arg1[%c0, %c0_1] : memref<64x4xbf16, #tpu.memory_space<vmem>>, vector<64x4xbf16>
    %c0_2 = arith.constant 0 : index
    %c0_3 = arith.constant 0 : index
    %4 = vector.load %arg2[%c0_2, %c0_3] : memref<4x128xbf16, #tpu.memory_space<vmem>>, vector<4x128xbf16>
    %cst = arith.constant dense<0.000000e+00> : vector<64x128xf32>
    %5 = tpu.matmul %3, %4, %cst {dimension_numbers = #tpu.dot_dimension_numbers<[1], [0], [0], [1], [0, 0, 1, 1], [], []>} : vector<64x4xbf16>, vector<4x128xbf16>, vector<64x128xf32> -> vector<64x128xf32>
    %c0_4 = arith.constant 0 : index
    %c0_5 = arith.constant 0 : index
    %6 = vector.load %arg3[%c0_4, %c0_5] : memref<64x128xf32, #tpu.memory_space<vmem>>, vector<64x128xf32>
    tpu.vector_store %arg3[%c0_4, %c0_5], %5 {strides = array<i32>} : memref<64x128xf32, #tpu.memory_space<vmem>>, vector<64x128xf32>,
    %c0_6 = arith.constant 0 : index
    %c0_7 = arith.constant 0 : index
    %7 = vector.load %arg4[%c0_6, %c0_7] : memref<1x128xf32, #tpu.memory_space<vmem>>, vector<1x128xf32>
    %cst_8 = arith.constant dense<0.000000e+00> : vector<128xf32>
    %8 = vector.multi_reduction <add>, %5, %cst_8 [0] : vector<64x128xf32> to vector<128xf32>
    %9 = vector.shape_cast %8 : vector<128xf32> to vector<1x128xf32>
    %10 = arith.addf %7, %9 : vector<1x128xf32>
    %c0_9 = arith.constant 0 : index
    %c0_10 = arith.constant 0 : index
    %11 = vector.load %arg4[%c0_9, %c0_10] : memref<1x128xf32, #tpu.memory_space<vmem>>, vector<1x128xf32>
    tpu.vector_store %arg4[%c0_9, %c0_10], %10 {strides = array<i32>} : memref<1x128xf32, #tpu.memory_space<vmem>>, vector<1x128xf32>,
    %c0_11 = arith.constant 0 : index
    %c0_12 = arith.constant 0 : index
    %12 = vector.load %arg5[%c0_11, %c0_12] : memref<1x128xf32, #tpu.memory_space<vmem>>, vector<1x128xf32>
    %13 = arith.mulf %5, %5 : vector<64x128xf32>
    %cst_13 = arith.constant dense<0.000000e+00> : vector<128xf32>
    %14 = vector.multi_reduction <add>, %13, %cst_13 [0] : vector<64x128xf32> to vector<128xf32>
    %15 = vector.shape_cast %14 : vector<128xf32> to vector<1x128xf32>
    %16 = arith.addf %12, %15 : vector<1x128xf32>
    %c0_14 = arith.constant 0 : index
    %c0_15 = arith.constant 0 : index
    %17 = vector.load %arg5[%c0_14, %c0_15] : memref<1x128xf32, #tpu.memory_space<vmem>>, vector<1x128xf32>
    tpu.vector_store %arg5[%c0_14, %c0_15], %16 {strides = array<i32>} : memref<1x128xf32, #tpu.memory_space<vmem>>, vector<1x128xf32>,
    return
  }
  func.func @transform_0(%arg0: i32) -> (i32, i32) {
    %c0_i32 = arith.constant 0 : i32
    %c0_i32_0 = arith.constant 0 : i32
    return %arg0, %c0_i32 : i32, i32
  }
  func.func @transform_1(%arg0: i32) -> (i32, i32) {
    %c0_i32 = arith.constant 0 : i32
    %c0_i32_0 = arith.constant 0 : i32
    %c0_i32_1 = arith.constant 0 : i32
    return %c0_i32, %c0_i32_0 : i32, i32
  }
  func.func @transform_2(%arg0: i32) -> (i32, i32) {
    %c0_i32 = arith.constant 0 : i32
    %c0_i32_0 = arith.constant 0 : i32
    return %arg0, %c0_i32 : i32, i32
  }
  func.func @transform_3(%arg0: i32) -> (i32, i32) {
    %c0_i32 = arith.constant 0 : i32
    %c0_i32_0 = arith.constant 0 : i32
    %c0_i32_1 = arith.constant 0 : i32
    return %c0_i32, %c0_i32_0 : i32, i32
  }
  func.func @transform_4(%arg0: i32) -> (i32, i32) {
    %c0_i32 = arith.constant 0 : i32
    %c0_i32_0 = arith.constant 0 : i32
    %c0_i32_1 = arith.constant 0 : i32
    return %c0_i32, %c0_i32_0 : i32, i32
  }
}

module attributes {stable_mosaic.version = 11 : i64} {
  func.func @_bn2_add_relu_kernel(%arg0: i32, %arg1: memref<64x128xf32, #tpu.memory_space<vmem>>, %arg2: memref<1x128xf32, #tpu.memory_space<vmem>>, %arg3: memref<1x128xf32, #tpu.memory_space<vmem>>, %arg4: memref<1x128xf32, #tpu.memory_space<vmem>>, %arg5: memref<1x128xf32, #tpu.memory_space<vmem>>, %arg6: memref<64x128xf32, #tpu.memory_space<vmem>>, %arg7: memref<1x128xf32, #tpu.memory_space<vmem>>, %arg8: memref<1x128xf32, #tpu.memory_space<vmem>>, %arg9: memref<1x128xf32, #tpu.memory_space<vmem>>, %arg10: memref<1x128xf32, #tpu.memory_space<vmem>>, %arg11: memref<64x128xf32, #tpu.memory_space<vmem>>) attributes {dimension_semantics = [#tpu.dimension_semantics<parallel>], iteration_bounds = array<i64: 2>, scalar_prefetch = 0 : i64, scratch_operands = 0 : i64, tpu.core_type = #tpu.core_type<tc>, window_params = [{transform_indices = @transform_0, window_bounds = array<i64: 64, 128>}, {pipeline_mode = #tpu.pipeline_mode<synchronous>, transform_indices = @transform_1, window_bounds = array<i64: 1, 128>}, {pipeline_mode = #tpu.pipeline_mode<synchronous>, transform_indices = @transform_2, window_bounds = array<i64: 1, 128>}, {pipeline_mode = #tpu.pipeline_mode<synchronous>, transform_indices = @transform_3, window_bounds = array<i64: 1, 128>}, {pipeline_mode = #tpu.pipeline_mode<synchronous>, transform_indices = @transform_4, window_bounds = array<i64: 1, 128>}, {transform_indices = @transform_5, window_bounds = array<i64: 64, 128>}, {pipeline_mode = #tpu.pipeline_mode<synchronous>, transform_indices = @transform_6, window_bounds = array<i64: 1, 128>}, {pipeline_mode = #tpu.pipeline_mode<synchronous>, transform_indices = @transform_7, window_bounds = array<i64: 1, 128>}, {pipeline_mode = #tpu.pipeline_mode<synchronous>, transform_indices = @transform_8, window_bounds = array<i64: 1, 128>}, {pipeline_mode = #tpu.pipeline_mode<synchronous>, transform_indices = @transform_9, window_bounds = array<i64: 1, 128>}, {transform_indices = @transform_10, window_bounds = array<i64: 64, 128>}]} {
    %c0 = arith.constant 0 : index
    %c0_0 = arith.constant 0 : index
    %0 = vector.load %arg1[%c0, %c0_0] : memref<64x128xf32, #tpu.memory_space<vmem>>, vector<64x128xf32>
    %c0_1 = arith.constant 0 : index
    %c0_2 = arith.constant 0 : index
    %1 = vector.load %arg2[%c0_1, %c0_2] : memref<1x128xf32, #tpu.memory_space<vmem>>, vector<1x128xf32>
    %c0_3 = arith.constant 0 : index
    %c0_4 = arith.constant 0 : index
    %2 = vector.load %arg3[%c0_3, %c0_4] : memref<1x128xf32, #tpu.memory_space<vmem>>, vector<1x128xf32>
    %c0_5 = arith.constant 0 : index
    %c0_6 = arith.constant 0 : index
    %3 = vector.load %arg4[%c0_5, %c0_6] : memref<1x128xf32, #tpu.memory_space<vmem>>, vector<1x128xf32>
    %c0_7 = arith.constant 0 : index
    %c0_8 = arith.constant 0 : index
    %4 = vector.load %arg5[%c0_7, %c0_8] : memref<1x128xf32, #tpu.memory_space<vmem>>, vector<1x128xf32>
    %cst = arith.constant 7.812500e-03 : f32
    %5 = vector.broadcast %cst : f32 to vector<1x128xf32>
    %6 = arith.mulf %1, %5 : vector<1x128xf32>
    %cst_9 = arith.constant 7.812500e-03 : f32
    %7 = vector.broadcast %cst_9 : f32 to vector<1x128xf32>
    %8 = arith.mulf %2, %7 : vector<1x128xf32>
    %9 = arith.mulf %6, %6 : vector<1x128xf32>
    %10 = arith.subf %8, %9 : vector<1x128xf32>
    %cst_10 = arith.constant 9.99999974E-6 : f32
    %11 = vector.broadcast %cst_10 : f32 to vector<1x128xf32>
    %12 = arith.addf %10, %11 : vector<1x128xf32>
    %13 = math.rsqrt %12 : vector<1x128xf32>
    %14 = arith.mulf %3, %13 : vector<1x128xf32>
    %15 = vector.broadcast %14 : vector<1x128xf32> to vector<64x128xf32>
    %16 = arith.mulf %0, %15 : vector<64x128xf32>
    %17 = arith.mulf %6, %14 : vector<1x128xf32>
    %18 = arith.subf %4, %17 : vector<1x128xf32>
    %19 = vector.broadcast %18 : vector<1x128xf32> to vector<64x128xf32>
    %20 = arith.addf %16, %19 : vector<64x128xf32>
    %c0_11 = arith.constant 0 : index
    %c0_12 = arith.constant 0 : index
    %21 = vector.load %arg6[%c0_11, %c0_12] : memref<64x128xf32, #tpu.memory_space<vmem>>, vector<64x128xf32>
    %c0_13 = arith.constant 0 : index
    %c0_14 = arith.constant 0 : index
    %22 = vector.load %arg7[%c0_13, %c0_14] : memref<1x128xf32, #tpu.memory_space<vmem>>, vector<1x128xf32>
    %c0_15 = arith.constant 0 : index
    %c0_16 = arith.constant 0 : index
    %23 = vector.load %arg8[%c0_15, %c0_16] : memref<1x128xf32, #tpu.memory_space<vmem>>, vector<1x128xf32>
    %c0_17 = arith.constant 0 : index
    %c0_18 = arith.constant 0 : index
    %24 = vector.load %arg9[%c0_17, %c0_18] : memref<1x128xf32, #tpu.memory_space<vmem>>, vector<1x128xf32>
    %c0_19 = arith.constant 0 : index
    %c0_20 = arith.constant 0 : index
    %25 = vector.load %arg10[%c0_19, %c0_20] : memref<1x128xf32, #tpu.memory_space<vmem>>, vector<1x128xf32>
    %cst_21 = arith.constant 7.812500e-03 : f32
    %26 = vector.broadcast %cst_21 : f32 to vector<1x128xf32>
    %27 = arith.mulf %22, %26 : vector<1x128xf32>
    %cst_22 = arith.constant 7.812500e-03 : f32
    %28 = vector.broadcast %cst_22 : f32 to vector<1x128xf32>
    %29 = arith.mulf %23, %28 : vector<1x128xf32>
    %30 = arith.mulf %27, %27 : vector<1x128xf32>
    %31 = arith.subf %29, %30 : vector<1x128xf32>
    %cst_23 = arith.constant 9.99999974E-6 : f32
    %32 = vector.broadcast %cst_23 : f32 to vector<1x128xf32>
    %33 = arith.addf %31, %32 : vector<1x128xf32>
    %34 = math.rsqrt %33 : vector<1x128xf32>
    %35 = arith.mulf %24, %34 : vector<1x128xf32>
    %36 = vector.broadcast %35 : vector<1x128xf32> to vector<64x128xf32>
    %37 = arith.mulf %21, %36 : vector<64x128xf32>
    %38 = arith.mulf %27, %35 : vector<1x128xf32>
    %39 = arith.subf %25, %38 : vector<1x128xf32>
    %40 = vector.broadcast %39 : vector<1x128xf32> to vector<64x128xf32>
    %41 = arith.addf %37, %40 : vector<64x128xf32>
    %42 = arith.addf %20, %41 : vector<64x128xf32>
    %cst_24 = arith.constant 0.000000e+00 : f32
    %43 = vector.broadcast %cst_24 : f32 to vector<64x128xf32>
    %44 = arith.maximumf %42, %43 : vector<64x128xf32>
    %c0_25 = arith.constant 0 : index
    %c0_26 = arith.constant 0 : index
    %45 = vector.load %arg11[%c0_25, %c0_26] : memref<64x128xf32, #tpu.memory_space<vmem>>, vector<64x128xf32>
    tpu.vector_store %arg11[%c0_25, %c0_26], %44 {strides = array<i32>} : memref<64x128xf32, #tpu.memory_space<vmem>>, vector<64x128xf32>,
    return
  }
  func.func @transform_0(%arg0: i32) -> (i32, i32) {
    %c0_i32 = arith.constant 0 : i32
    %c0_i32_0 = arith.constant 0 : i32
    return %arg0, %c0_i32 : i32, i32
  }
  func.func @transform_1(%arg0: i32) -> (i32, i32) {
    %c0_i32 = arith.constant 0 : i32
    %c0_i32_0 = arith.constant 0 : i32
    %c0_i32_1 = arith.constant 0 : i32
    return %c0_i32, %c0_i32_0 : i32, i32
  }
  func.func @transform_2(%arg0: i32) -> (i32, i32) {
    %c0_i32 = arith.constant 0 : i32
    %c0_i32_0 = arith.constant 0 : i32
    %c0_i32_1 = arith.constant 0 : i32
    return %c0_i32, %c0_i32_0 : i32, i32
  }
  func.func @transform_3(%arg0: i32) -> (i32, i32) {
    %c0_i32 = arith.constant 0 : i32
    %c0_i32_0 = arith.constant 0 : i32
    %c0_i32_1 = arith.constant 0 : i32
    return %c0_i32, %c0_i32_0 : i32, i32
  }
  func.func @transform_4(%arg0: i32) -> (i32, i32) {
    %c0_i32 = arith.constant 0 : i32
    %c0_i32_0 = arith.constant 0 : i32
    %c0_i32_1 = arith.constant 0 : i32
    return %c0_i32, %c0_i32_0 : i32, i32
  }
  func.func @transform_5(%arg0: i32) -> (i32, i32) {
    %c0_i32 = arith.constant 0 : i32
    %c0_i32_0 = arith.constant 0 : i32
    return %arg0, %c0_i32 : i32, i32
  }
  func.func @transform_6(%arg0: i32) -> (i32, i32) {
    %c0_i32 = arith.constant 0 : i32
    %c0_i32_0 = arith.constant 0 : i32
    %c0_i32_1 = arith.constant 0 : i32
    return %c0_i32, %c0_i32_0 : i32, i32
  }
  func.func @transform_7(%arg0: i32) -> (i32, i32) {
    %c0_i32 = arith.constant 0 : i32
    %c0_i32_0 = arith.constant 0 : i32
    %c0_i32_1 = arith.constant 0 : i32
    return %c0_i32, %c0_i32_0 : i32, i32
  }
  func.func @transform_8(%arg0: i32) -> (i32, i32) {
    %c0_i32 = arith.constant 0 : i32
    %c0_i32_0 = arith.constant 0 : i32
    %c0_i32_1 = arith.constant 0 : i32
    return %c0_i32, %c0_i32_0 : i32, i32
  }
  func.func @transform_9(%arg0: i32) -> (i32, i32) {
    %c0_i32 = arith.constant 0 : i32
    %c0_i32_0 = arith.constant 0 : i32
    %c0_i32_1 = arith.constant 0 : i32
    return %c0_i32, %c0_i32_0 : i32, i32
  }
  func.func @transform_10(%arg0: i32) -> (i32, i32) {
    %c0_i32 = arith.constant 0 : i32
    %c0_i32_0 = arith.constant 0 : i32
    return %arg0, %c0_i32 : i32, i32
  }
}

</mosaic_0001>

<bundles_post_ra>
// kernel: resnet_basic_block.7
= control target key start
LH: loop header
LB: loop body
LE: loop exit
PB: predicated region body
PF: predicated region fallthrough
CT: control target
= control target key end

     0   :  { %s581_s15 = smov 0   ;;  %s651_s0 = inlined_call_operand.vmem [shape: bf16[128,72], index: 0, kind: input, shape index: {}]   ;;  %s652_s1 = inlined_call_operand.vmem [shape: bf16[72,128], index: 1, kind: input, shape index: {}]   ;;  %s653_s2 = inlined_call_operand.vmem [shape: f32[128,128], index: 2, kind: output, shape index: {0}]   ;;  %s654_s3 = inlined_call_operand.vmem [shape: f32[1,128], index: 3, kind: output, shape index: {1}]   ;;  %s655_s4 = inlined_call_operand.vmem [shape: f32[1,128], index: 4, kind: output, shape index: {2}]  }
   0x1 LB: > { %s465_s16 = sadd.s32 4294967295, %s553_s15   ;;  %p469_p0 = scmp.ge.s32.totalorder %s553_s15, 1  ;;  %s553_s15 = sphi %s581_s15, %s15_s15  }
   0x2   : > { %p158_p1 = scmp.lt.s32.totalorder %s553_s15, 3 }
   0x4   : > { %p159_p2 = pnand %p469_p0, %p158_p1 }
   0x5   : > { %s470_s17 = sshll.u32 (!%p159_p2), %s465_s16, 3  ;;  %p474_p4 = scmp.ne.s32.totalorder (!%p159_p2), %s465_s16, 0 }
   0x6   : > { %162 = sbr.rel (%p159_p2) target bundleno = 287 (0x11f), region = 28  ;;  %p185_p3 = scmp.lt.s32.totalorder (!%p159_p2), %s470_s17, 15 }
   0xd   : > { %s657_s17 = smov (!%p185_p3, %s470_s17), 15  ;;  %200 = sbr.rel (%p474_p4) target bundleno = 20 (0x14), region = 32 }
   0xe   : > { %s471_s18 = sshll.u32 %s657_s17, 2  ;;  %s473_s19 = sshll.u32 %s657_s17, 3  ;;  %v555_v0 = vmov (!%p474_p4), 0.0  }
   0xf   : > { %s592_s22 = scalar_lea.vmem %s651_s0, %s471_s18  ;;  %s597_s25 = scalar_lea.vmem %s653_s2, %s473_s19  ;;  %201 = vst [vmem:[%s654_s3] sm:$0x1] (!%p474_p4), %v555_v0  ;;  %202 = vst [vmem:[%s655_s4] sm:$0x1] (!%p474_p4), %v555_v0 }
  0x14 PF: > { %v538_v1 = vld [vmem:[%s652_s1] sm:$0xff]   ;;  %v539_v2 = vld [vmem:[%s652_s1 + $0x8] sm:$0xff]   ;;  %v540_v3 = vld [vmem:[%s652_s1 + $0x10] sm:$0xff]   ;;  %vm267_vm0 = vcmask 588800   ;;  %vm280_vm1 = vcmask 1043456  }
  0x15   : > { %499 = vmatprep.subr.bf16.mxu0 %v538_v1  ;;  %517 = vmatprep.subr.bf16.mxu1 %v538_v1  ;;  %v543_v4 = vld [vmem:[%s592_s22] sm:$0xff]   ;;  %v545_v5 = vld [vmem:[%s592_s22 + $0x10] sm:$0xff]   ;;  %v541_v6 = vld [vmem:[%s652_s1 + $0x18] sm:$0xff]  }
  0x16   : > { %500 = vmatpush3.bf16.msra.mxu0 %v538_v1  ;;  %522 = vmatpush3.bf16.msra.mxu1 %v538_v1  ;;  %v542_v7 = vld [vmem:[%s652_s1 + $0x20] ss:$0 sps:$4 sm:$0xff]   ;;  %v544_v9 = vld [vmem:[%s592_s22 + $0x8] sm:$0xff]   ;;  %v546_v10 = vld [vmem:[%s592_s22 + $0x18] sm:$0xff]  }
  0x17   : > { %501 = vmatprep.subr.bf16.mxu0 %v539_v2  ;;  %518 = vmatprep.subr.bf16.mxu1 %v539_v2  ;;  %v282_v8 = vsel %vm280_vm1, %v542_v7, 0  ;;  %v357_v50 = vld [vmem:[%s654_s3] sm:$0x1] }
  0x18   : > { %509 = vmatprep.mubr.msk.bf16.mxu0 %vm267_vm0, %v543_v4  ;;  %513 = vmatprep.mubr.msk.bf16.mxu1 %vm267_vm0, %v545_v5  ;;  %v373_v53 = vld [vmem:[%s655_s4] sm:$0x1] }
  0x1a   : > { %502 = vmatpush3.bf16.msra.mxu0 %v539_v2  ;;  %523 = vmatpush3.bf16.msra.mxu1 %v539_v2 }
  0x1b   : > { %503 = vmatprep.subr.bf16.mxu0 %v540_v3  ;;  %519 = vmatprep.subr.bf16.mxu1 %v540_v3 }
  0x1e   : > { %504 = vmatpush3.bf16.msra.mxu0 %v540_v3  ;;  %524 = vmatpush3.bf16.msra.mxu1 %v540_v3 }
  0x1f   : > { %505 = vmatprep.subr.bf16.mxu0 %v541_v6  ;;  %520 = vmatprep.subr.bf16.mxu1 %v541_v6 }
  0x22   : > { %506 = vmatpush3.bf16.msra.mxu0 %v541_v6  ;;  %525 = vmatpush3.bf16.msra.mxu1 %v541_v6 }
  0x23   : > { %527 = vmatprep.subr.msk.bf16.mxu0 %vm280_vm1, %v542_v7  ;;  %528 = vmatprep.subr.msk.bf16.mxu1 %vm280_vm1, %v542_v7 }
  0x26   : > { %508 = vmatpush3.bf16.msra.mxu0 %v282_v8  ;;  %526 = vmatpush3.bf16.msra.mxu1 %v282_v8 }
  0x29   : > { %510 = vmatmul.mubr.msk.bf16.vlgmr.msra.gmra.mrb[0].mxu0 %vm267_vm0, %v544_v9  ;;  %514 = vmatmul.mubr.msk.bf16.vlgmr.msra.gmra.mrb[0].mxu1 %vm267_vm0, %v546_v10 }
  0xfc   : > { %v511_v11 = vpop.f32.mrb[0].mxu0  ;;  %v515_v12 = vpop.f32.mrb[0].mxu1 }
  0xfd   : > { %351 = vst [vmem:[%s597_s25 + $0x10] sm:$0xff] %v511_v11  ;;  %v318_v13 = vpop.f32.mrb[1].mxu0  ;;  %355 = vst [vmem:[%s597_s25 + $0x30] sm:$0xff] %v515_v12  ;;  %v334_v14 = vpop.f32.mrb[1].mxu1  ;;  %v376_v22 = vmul.f32 %v511_v11, %v511_v11  ;;  %v380_v34 = vmul.f32 %v515_v12, %v515_v12 }
  0xfe   : > { %349 = vst [vmem:[%s597_s25] sm:$0xff] %v318_v13  ;;  %v512_v15 = vpop.f32.mrb[2].mxu0  ;;  %353 = vst [vmem:[%s597_s25 + $0x20] sm:$0xff] %v334_v14  ;;  %v516_v16 = vpop.f32.mrb[2].mxu1  ;;  %v374_v19 = vmul.f32 %v318_v13, %v318_v13  ;;  %v378_v28 = vmul.f32 %v334_v14, %v334_v14 }
  0xff   : > { %352 = vst [vmem:[%s597_s25 + $0x18] sm:$0xff] %v512_v15  ;;  %v321_v17 = vpop.f32.mrb[3].mxu0  ;;  %356 = vst [vmem:[%s597_s25 + $0x38] sm:$0xff] %v516_v16  ;;  %v337_v18 = vpop.f32.mrb[3].mxu1  ;;  %v377_v25 = vmul.f32 %v512_v15, %v512_v15  ;;  %v381_v37 = vmul.f32 %v516_v16, %v516_v16 }
 0x100   : > { %350 = vst [vmem:[%s597_s25 + $0x8] sm:$0xff] %v321_v17  ;;  %v358_v20 = vadd.f32 %v321_v17, %v318_v13  ;;  %v375_v21 = vmul.f32 %v321_v17, %v321_v17  ;;  %354 = vst [vmem:[%s597_s25 + $0x28] sm:$0xff] %v337_v18  ;;  %v379_v33 = vmul.f32 %v337_v18, %v337_v18 }
 0x102   : > { %v359_v23 = vadd.f32 %v511_v11, %v358_v20  ;;  %v382_v24 = vadd.f32 %v375_v21, %v374_v19 }
 0x104   : > { %v383_v26 = vadd.f32 %v382_v24, %v376_v22  ;;  %v360_v27 = vadd.f32 %v512_v15, %v359_v23 }
 0x106   : > { %v361_v29 = vadd.f32 %v360_v27, %v334_v14  ;;  %v384_v30 = vadd.f32 %v383_v26, %v377_v25 }
 0x108   : > { %v385_v31 = vadd.f32 %v384_v30, %v378_v28  ;;  %v362_v32 = vadd.f32 %v361_v29, %v337_v18 }
 0x10a   : > { %v363_v35 = vadd.f32 %v515_v12, %v362_v32  ;;  %v386_v36 = vadd.f32 %v385_v31, %v379_v33 }
 0x10c   : > { %v364_v38 = vadd.f32 %v516_v16, %v363_v35  ;;  %v387_v39 = vadd.f32 %v386_v36, %v380_v34 }
 0x10e   : > { %v365_v40 = vrot.slane %v364_v38, 4  ;;  %v388_v41 = vadd.f32 %v387_v39, %v381_v37 }
 0x110   : > { %v366_v42 = vadd.f32 %v365_v40, %v364_v38  ;;  %v389_v43 = vrot.slane %v388_v41, 4 }
 0x112   : > { %v367_v44 = vrot.slane %v366_v42, 2  ;;  %v390_v45 = vadd.f32 %v389_v43, %v388_v41 }
 0x114   : > { %v368_v46 = vadd.f32 %v367_v44, %v366_v42  ;;  %v391_v47 = vrot.slane %v390_v45, 2 }
 0x116   : > { %v369_v48 = vrot.slane %v368_v46, 1  ;;  %v392_v49 = vadd.f32 %v391_v47, %v390_v45 }
 0x118   : > { %v370_v51 = vadd.f32 %v369_v48, %v368_v46  ;;  %v393_v52 = vrot.slane %v392_v49, 1 }
 0x11a   : > { %v371_v54 = vadd.f32 %v370_v51, %v357_v50  ;;  %v394_v55 = vadd.f32 %v393_v52, %v392_v49 }
 0x11c   : > { %372 = vst [vmem:[%s654_s3] sm:$0x1] %v371_v54  ;;  %v395_v56 = vadd.f32 %v394_v55, %v373_v53 }
 0x11e   : > { %396 = vst [vmem:[%s655_s4] sm:$0x1] %v395_v56 }
 0x11f PF: > { %s15_s15 = sadd.s32 1, %s553_s15  }
 0x120   : > { %p12_p5 = scmp.ge.s32.totalorder %s15_s15, 4  }
 0x122   :  { %14 = sbr.rel (!%p12_p5) target bundleno = 1 (0x1), region = 78 }

// kernel: resnet_basic_block.5
= control target key start
LH: loop header
LB: loop body
LE: loop exit
PB: predicated region body
PF: predicated region fallthrough
CT: control target
= control target key end

     0   :  { %s551_s15 = smov 0   ;;  %s609_s0 = inlined_call_operand.vmem [shape: bf16[128,36], index: 0, kind: input, shape index: {}]   ;;  %s610_s1 = inlined_call_operand.vmem [shape: bf16[36,128], index: 1, kind: input, shape index: {}]   ;;  %s611_s2 = inlined_call_operand.vmem [shape: f32[128,128], index: 2, kind: output, shape index: {0}]   ;;  %s612_s3 = inlined_call_operand.vmem [shape: f32[1,128], index: 3, kind: output, shape index: {1}]   ;;  %s613_s4 = inlined_call_operand.vmem [shape: f32[1,128], index: 4, kind: output, shape index: {2}]  }
   0x1 LB: > { %s449_s16 = sadd.s32 4294967295, %s523_s15   ;;  %p453_p0 = scmp.ge.s32.totalorder %s523_s15, 1  ;;  %s523_s15 = sphi %s551_s15, %s15_s15  }
   0x2   : > { %p158_p1 = scmp.lt.s32.totalorder %s523_s15, 3 }
   0x4   : > { %p159_p2 = pnand %p453_p0, %p158_p1 }
   0x5   : > { %s454_s17 = sshll.u32 (!%p159_p2), %s449_s16, 3  ;;  %p458_p4 = scmp.ne.s32.totalorder (!%p159_p2), %s449_s16, 0 }
   0x6   : > { %162 = sbr.rel (%p159_p2) target bundleno = 279 (0x117), region = 28  ;;  %p185_p3 = scmp.lt.s32.totalorder (!%p159_p2), %s454_s17, 15 }
   0xd   : > { %s615_s17 = smov (!%p185_p3, %s454_s17), 15  ;;  %200 = sbr.rel (%p458_p4) target bundleno = 20 (0x14), region = 32 }
   0xe   : > { %s455_s18 = sshll.u32 %s615_s17, 2  ;;  %s457_s19 = sshll.u32 %s615_s17, 3  ;;  %v525_v0 = vmov (!%p458_p4), 0.0  }
   0xf   : > { %s188_s22 = scalar_lea.vmem %s609_s0, %s455_s18  ;;  %s565_s25 = scalar_lea.vmem %s611_s2, %s457_s19  ;;  %201 = vst [vmem:[%s612_s3] sm:$0x1] (!%p458_p4), %v525_v0  ;;  %202 = vst [vmem:[%s613_s4] sm:$0x1] (!%p458_p4), %v525_v0 }
  0x14 PF: > { %v510_v1 = vld [vmem:[%s610_s1] sm:$0xff]   ;;  %v511_v2 = vld [vmem:[%s610_s1 + $0x8] sm:$0xff]   ;;  %vm251_vm0 = vcmask 293888   ;;  %v512_v3 = vld [vmem:[%s610_s1 + $0x10] ss:$0 sps:$4 sm:$0x33]  }
  0x15   : > { %479 = vmatprep.subr.bf16.mxu0 %v510_v1  ;;  %493 = vmatprep.subr.bf16.mxu1 %v510_v1  ;;  %v513_v4 = vld [vmem:[%s188_s22] sm:$0xff]   ;;  %vm264_vm1 = vcmask 1041408   ;;  %v515_v5 = vld [vmem:[%s188_s22 + $0x10] sm:$0xff]   ;;  %v514_v7 = vld [vmem:[%s188_s22 + $0x8] sm:$0xff]  }
  0x16   : > { %480 = vmatpush3.bf16.msra.mxu0 %v510_v1  ;;  %496 = vmatpush3.bf16.msra.mxu1 %v510_v1  ;;  %v266_v6 = vsel %vm264_vm1, %v512_v3, 0  ;;  %v516_v8 = vld [vmem:[%s188_s22 + $0x18] sm:$0xff]   ;;  %v341_v48 = vld [vmem:[%s612_s3] sm:$0x1] }
  0x17   : > { %481 = vmatprep.subr.bf16.mxu0 %v511_v2  ;;  %494 = vmatprep.subr.bf16.mxu1 %v511_v2  ;;  %v357_v51 = vld [vmem:[%s613_s4] sm:$0x1] }
  0x18   : > { %485 = vmatprep.mubr.msk.bf16.mxu0 %vm251_vm0, %v513_v4  ;;  %489 = vmatprep.mubr.msk.bf16.mxu1 %vm251_vm0, %v515_v5 }
  0x1a   : > { %482 = vmatpush3.bf16.msra.mxu0 %v511_v2  ;;  %497 = vmatpush3.bf16.msra.mxu1 %v511_v2 }
  0x1b   : > { %499 = vmatprep.subr.msk.bf16.mxu0 %vm264_vm1, %v512_v3  ;;  %500 = vmatprep.subr.msk.bf16.mxu1 %vm264_vm1, %v512_v3 }
  0x1e   : > { %484 = vmatpush3.bf16.msra.mxu0 %v266_v6  ;;  %498 = vmatpush3.bf16.msra.mxu1 %v266_v6 }
  0x21   : > { %486 = vmatmul.mubr.msk.bf16.vlgmr.msra.gmra.mrb[0].mxu0 %vm251_vm0, %v514_v7  ;;  %490 = vmatmul.mubr.msk.bf16.vlgmr.msra.gmra.mrb[0].mxu1 %vm251_vm0, %v516_v8 }
  0xf4   : > { %v487_v9 = vpop.f32.mrb[0].mxu0  ;;  %v491_v10 = vpop.f32.mrb[0].mxu1 }
  0xf5   : > { %335 = vst [vmem:[%s565_s25 + $0x10] sm:$0xff] %v487_v9  ;;  %v302_v11 = vpop.f32.mrb[1].mxu0  ;;  %339 = vst [vmem:[%s565_s25 + $0x30] sm:$0xff] %v491_v10  ;;  %v318_v12 = vpop.f32.mrb[1].mxu1  ;;  %v360_v20 = vmul.f32 %v487_v9, %v487_v9  ;;  %v364_v32 = vmul.f32 %v491_v10, %v491_v10 }
  0xf6   : > { %333 = vst [vmem:[%s565_s25] sm:$0xff] %v302_v11  ;;  %v488_v13 = vpop.f32.mrb[2].mxu0  ;;  %337 = vst [vmem:[%s565_s25 + $0x20] sm:$0xff] %v318_v12  ;;  %v492_v14 = vpop.f32.mrb[2].mxu1  ;;  %v358_v17 = vmul.f32 %v302_v11, %v302_v11  ;;  %v362_v26 = vmul.f32 %v318_v12, %v318_v12 }
  0xf7   : > { %336 = vst [vmem:[%s565_s25 + $0x18] sm:$0xff] %v488_v13  ;;  %v305_v15 = vpop.f32.mrb[3].mxu0  ;;  %340 = vst [vmem:[%s565_s25 + $0x38] sm:$0xff] %v492_v14  ;;  %v321_v16 = vpop.f32.mrb[3].mxu1  ;;  %v361_v23 = vmul.f32 %v488_v13, %v488_v13  ;;  %v365_v35 = vmul.f32 %v492_v14, %v492_v14 }
  0xf8   : > { %334 = vst [vmem:[%s565_s25 + $0x8] sm:$0xff] %v305_v15  ;;  %v342_v18 = vadd.f32 %v305_v15, %v302_v11  ;;  %v359_v19 = vmul.f32 %v305_v15, %v305_v15  ;;  %338 = vst [vmem:[%s565_s25 + $0x28] sm:$0xff] %v321_v16  ;;  %v363_v31 = vmul.f32 %v321_v16, %v321_v16 }
  0xfa   : > { %v343_v21 = vadd.f32 %v487_v9, %v342_v18  ;;  %v366_v22 = vadd.f32 %v359_v19, %v358_v17 }
  0xfc   : > { %v367_v24 = vadd.f32 %v366_v22, %v360_v20  ;;  %v344_v25 = vadd.f32 %v488_v13, %v343_v21 }
  0xfe   : > { %v345_v27 = vadd.f32 %v344_v25, %v318_v12  ;;  %v368_v28 = vadd.f32 %v367_v24, %v361_v23 }
 0x100   : > { %v369_v29 = vadd.f32 %v368_v28, %v362_v26  ;;  %v346_v30 = vadd.f32 %v345_v27, %v321_v16 }
 0x102   : > { %v347_v33 = vadd.f32 %v491_v10, %v346_v30  ;;  %v370_v34 = vadd.f32 %v369_v29, %v363_v31 }
 0x104   : > { %v348_v36 = vadd.f32 %v492_v14, %v347_v33  ;;  %v371_v37 = vadd.f32 %v370_v34, %v364_v32 }
 0x106   : > { %v349_v38 = vrot.slane %v348_v36, 4  ;;  %v372_v39 = vadd.f32 %v371_v37, %v365_v35 }
 0x108   : > { %v350_v40 = vadd.f32 %v349_v38, %v348_v36  ;;  %v373_v41 = vrot.slane %v372_v39, 4 }
 0x10a   : > { %v351_v42 = vrot.slane %v350_v40, 2  ;;  %v374_v43 = vadd.f32 %v373_v41, %v372_v39 }
 0x10c   : > { %v352_v44 = vadd.f32 %v351_v42, %v350_v40  ;;  %v375_v45 = vrot.slane %v374_v43, 2 }
 0x10e   : > { %v353_v46 = vrot.slane %v352_v44, 1  ;;  %v376_v47 = vadd.f32 %v375_v45, %v374_v43 }
 0x110   : > { %v354_v49 = vadd.f32 %v353_v46, %v352_v44  ;;  %v377_v50 = vrot.slane %v376_v47, 1 }
 0x112   : > { %v355_v52 = vadd.f32 %v354_v49, %v341_v48  ;;  %v378_v53 = vadd.f32 %v377_v50, %v376_v47 }
 0x114   : > { %356 = vst [vmem:[%s612_s3] sm:$0x1] %v355_v52  ;;  %v379_v54 = vadd.f32 %v378_v53, %v357_v51 }
 0x116   : > { %380 = vst [vmem:[%s613_s4] sm:$0x1] %v379_v54 }
 0x117 PF: > { %s15_s15 = sadd.s32 1, %s523_s15  }
 0x118   : > { %p12_p5 = scmp.ge.s32.totalorder %s15_s15, 4  }
 0x11a   :  { %14 = sbr.rel (!%p12_p5) target bundleno = 1 (0x1), region = 78 }

// kernel: resnet_basic_block.6
= control target key start
LH: loop header
LB: loop body
LE: loop exit
PB: predicated region body
PF: predicated region fallthrough
CT: control target
= control target key end

     0   :  { %s479_s18 = smov 0   ;;  %s512_s0 = inlined_call_operand.vmem [shape: f32[128,128], index: 0, kind: input, shape index: {}]   ;;  %s513_s1 = inlined_call_operand.vmem [shape: f32[1,128], index: 1, kind: input, shape index: {}]   ;;  %s514_s2 = inlined_call_operand.vmem [shape: f32[1,128], index: 2, kind: input, shape index: {}]   ;;  %s515_s3 = inlined_call_operand.vmem [shape: f32[1,128], index: 3, kind: input, shape index: {}]   ;;  %s516_s4 = inlined_call_operand.vmem [shape: f32[1,128], index: 4, kind: input, shape index: {}]   ;;  %s517_s5 = inlined_call_operand.vmem [shape: bf16[128,128], index: 5, kind: output, shape index: {}]  }
   0x1 LB: > { %s381_s19 = sadd.s32 4294967295, %s447_s18   ;;  %p385_p0 = scmp.ge.s32.totalorder %s447_s18, 1  ;;  %s447_s18 = sphi %s479_s18, %s15_s18  }
   0x2   : > { %p188_p1 = scmp.lt.s32.totalorder %s447_s18, 3 }
   0x4   : > { %p189_p2 = pnand %p385_p0, %p188_p1 }
   0x5   : > { %v236_v0 = vld [vmem:[%s513_s1] sm:$0x1] (!%p189_p2)  ;;  %s386_s24 = sshll.u32 (!%p189_p2), %s381_s19, 3  ;;  %v248_v7 = vlaneseq (!%p189_p2) }
   0x6   : > { %192 = sbr.rel (%p189_p2) target bundleno = 41 (0x29), region = 40  ;;  %v237_v1 = vld [vmem:[%s514_s2] sm:$0x1] (!%p189_p2)  ;;  %v240_v2 = vmul.f32 (!%p189_p2), 0.0078125, %v236_v0  ;;  %p217_p3 = scmp.lt.s32.totalorder (!%p189_p2), %s386_s24, 15 }
   0x7   : > { %v241_v3 = vmul.f32 (!%p189_p2), 0.0078125, %v237_v1  ;;  %v249_v8 = vshrl.u32 (!%p189_p2), %v248_v7, 7  ;;  %v238_v9 = vld [vmem:[%s515_s3] sm:$0x1] (!%p189_p2) }
   0x8   : > { %v242_v4 = vmul.f32 (!%p189_p2), %v240_v2, %v240_v2  ;;  %v239_v13 = vld [vmem:[%s516_s4] sm:$0x1] (!%p189_p2) }
   0x9   : > { %v250_v10 = vsub.s32 (!%p189_p2), 0, %v249_v8 }
   0xa   : > { %v243_v5 = vsub.f32 (!%p189_p2), %v241_v3, %v242_v4 }
   0xc   : > { %v244_v6 = vadd.f32 (!%p189_p2), 1e-05, %v243_v5 }
   0xd   : > { %s519_s24 = smov (!%p217_p3, %s386_s24), 15 }
   0xe   : > { %439 = vrsqrt.f32 %v244_v6  ;;  %s387_s25 = sshll.u32 %s519_s24, 3  ;;  %s389_s8 = sshll.u32 %s519_s24, 2 }
   0xf   : > { %s220_s28 = scalar_lea.vmem %s512_s0, %s387_s25  ;;  %s226_s11 = scalar_lea.vmem %s517_s5, %s389_s8 }
  0x10   : > { %v228_v12 = vld [vmem:[%s220_s28] sm:$0xff]  ;;  %v229_v15 = vld [vmem:[%s220_s28 + $0x8] sm:$0xff]  ;;  %v230_v16 = vld [vmem:[%s220_s28 + $0x10] sm:$0xff] }
  0x11   : > { %v231_v17 = vld [vmem:[%s220_s28 + $0x18] sm:$0xff]  ;;  %v232_v20 = vld [vmem:[%s220_s28 + $0x20] sm:$0xff]  ;;  %v233_v21 = vld [vmem:[%s220_s28 + $0x28] sm:$0xff] }
  0x12   : > { %v234_v22 = vld [vmem:[%s220_s28 + $0x30] sm:$0xff]  ;;  %v235_v23 = vld [vmem:[%s220_s28 + $0x38] sm:$0xff] }
  0x18   : > { %v440_v11 = vpop.eup %439 }
  0x19   : > { %v246_v14 = vmul.f32 %v440_v11, %v238_v9 }
  0x1b   : > { %v251_v18 = vrot.slane %v246_v14, %v250_v10  ;;  %v261_v19 = vmul.f32 %v246_v14, %v240_v2 }
  0x1d   : > { %v253_v24 = vmul.f32 %v251_v18, %v228_v12  ;;  %v254_v25 = vmul.f32 %v251_v18, %v229_v15  ;;  %v262_v26 = vsub.f32 %v239_v13, %v261_v19  ;;  %v255_v27 = vmul.f32 %v251_v18, %v230_v16 }
  0x1e   : > { %v256_v28 = vmul.f32 %v251_v18, %v231_v17  ;;  %v257_v29 = vmul.f32 %v251_v18, %v232_v20  ;;  %v258_v30 = vmul.f32 %v251_v18, %v233_v21  ;;  %v259_v31 = vmul.f32 %v251_v18, %v234_v22 }
  0x1f   : > { %v267_v32 = vrot.slane %v262_v26, %v250_v10  ;;  %v260_v33 = vmul.f32 %v251_v18, %v235_v23 }
  0x21   : > { %v269_v34 = vadd.f32 %v267_v32, %v253_v24  ;;  %v270_v35 = vadd.f32 %v267_v32, %v254_v25  ;;  %v271_v36 = vadd.f32 %v267_v32, %v255_v27  ;;  %v272_v37 = vadd.f32 %v267_v32, %v256_v28 }
  0x22   : > { %v273_v38 = vadd.f32 %v267_v32, %v257_v29  ;;  %v274_v39 = vadd.f32 %v267_v32, %v258_v30  ;;  %v275_v40 = vadd.f32 %v267_v32, %v259_v31  ;;  %v276_v41 = vadd.f32 %v267_v32, %v260_v33 }
  0x23   : > { %v277_v42 = vmax.f32 %v269_v34, 0.0  ;;  %v278_v43 = vmax.f32 %v270_v35, 0.0  ;;  %v279_v44 = vmax.f32 %v271_v36, 0.0  ;;  %v280_v45 = vmax.f32 %v272_v37, 0.0 }
  0x24   : > { %v281_v46 = vmax.f32 %v273_v38, 0.0  ;;  %v282_v47 = vmax.f32 %v274_v39, 0.0  ;;  %v283_v48 = vmax.f32 %v275_v40, 0.0  ;;  %v284_v49 = vmax.f32 %v276_v41, 0.0 }
  0x25   : > { %v411_v50 = vpack.c.bf16 %v278_v43, %v277_v42  ;;  %v416_v51 = vpack.c.bf16 %v280_v45, %v279_v44 }
  0x26   : > { %v421_v52 = vpack.c.bf16 %v282_v47, %v281_v46  ;;  %v426_v53 = vpack.c.bf16 %v284_v49, %v283_v48 }
  0x27   : > { %412 = vst [vmem:[%s226_s11] sm:$0xff] %v411_v50   ;;  %428 = vst [vmem:[%s226_s11 + $0x8] sm:$0xff] %v416_v51  }
  0x28   : > { %429 = vst [vmem:[%s226_s11 + $0x10] sm:$0xff] %v421_v52   ;;  %430 = vst [vmem:[%s226_s11 + $0x18] sm:$0xff] %v426_v53  }
  0x29 PF: > { %s15_s18 = sadd.s32 1, %s447_s18  }
  0x2a   : > { %p12_p4 = scmp.ge.s32.totalorder %s15_s18, 4  }
  0x2c   :  { %14 = sbr.rel (!%p12_p4) target bundleno = 1 (0x1), region = 70 }

// kernel: resnet_basic_block.8
= control target key start
LH: loop header
LB: loop body
LE: loop exit
PB: predicated region body
PF: predicated region fallthrough
CT: control target
= control target key end

     0   :  { %s516_s15 = smov 0   ;;  %s564_s0 = inlined_call_operand.vmem [shape: bf16[128,4], index: 0, kind: input, shape index: {}]   ;;  %s565_s1 = inlined_call_operand.vmem [shape: bf16[4,128], index: 1, kind: input, shape index: {}]   ;;  %s566_s2 = inlined_call_operand.vmem [shape: f32[128,128], index: 2, kind: output, shape index: {0}]   ;;  %s567_s3 = inlined_call_operand.vmem [shape: f32[1,128], index: 3, kind: output, shape index: {1}]   ;;  %s568_s4 = inlined_call_operand.vmem [shape: f32[1,128], index: 4, kind: output, shape index: {2}]  }
   0x1 LB: > { %s430_s16 = sadd.s32 4294967295, %s488_s15   ;;  %p434_p0 = scmp.ge.s32.totalorder %s488_s15, 1  ;;  %s488_s15 = sphi %s516_s15, %s15_s15  }
   0x2   : > { %p158_p1 = scmp.lt.s32.totalorder %s488_s15, 3 }
   0x4   : > { %p159_p2 = pnand %p434_p0, %p158_p1 }
   0x5   : > { %s435_s17 = sshll.u32 (!%p159_p2), %s430_s16, 3  ;;  %p439_p4 = scmp.ne.s32.totalorder (!%p159_p2), %s430_s16, 0 }
   0x6   : > { %162 = sbr.rel (%p159_p2) target bundleno = 271 (0x10f), region = 28  ;;  %p185_p3 = scmp.lt.s32.totalorder (!%p159_p2), %s435_s17, 15 }
   0xd   : > { %s570_s17 = smov (!%p185_p3, %s435_s17), 15  ;;  %200 = sbr.rel (%p439_p4) target bundleno = 20 (0x14), region = 32 }
   0xe   : > { %s436_s18 = sshll.u32 %s570_s17, 2  ;;  %s438_s19 = sshll.u32 %s570_s17, 3  ;;  %v490_v0 = vmov (!%p439_p4), 0.0  }
   0xf   : > { %s188_s22 = scalar_lea.vmem %s564_s0, %s436_s18  ;;  %s530_s25 = scalar_lea.vmem %s566_s2, %s438_s19  ;;  %201 = vst [vmem:[%s567_s3] sm:$0x1] (!%p439_p4), %v490_v0  ;;  %202 = vst [vmem:[%s568_s4] sm:$0x1] (!%p439_p4), %v490_v0 }
  0x14 PF: > { %v211_v1 = vld [vmem:[%s565_s1] sm:$0x3]  ;;  %vm245_vm0 = vcmask 1041408   ;;  %vm232_vm1 = vcmask 31744   ;;  %v479_v4 = vld [vmem:[%s188_s22 + $0x8] sm:$0xff]   ;;  %v480_v5 = vld [vmem:[%s188_s22 + $0x10] sm:$0xff]  }
  0x15   : > { %v478_v2 = vld [vmem:[%s188_s22] sm:$0xff]   ;;  %467 = vmatprep.subr.msk.bf16.mxu0 %vm245_vm0, %v211_v1  ;;  %v247_v3 = vsel %vm245_vm0, %v211_v1, 0  ;;  %468 = vmatprep.subr.msk.bf16.mxu1 %vm245_vm0, %v211_v1  ;;  %v481_v6 = vld [vmem:[%s188_s22 + $0x18] sm:$0xff]  }
  0x16   : > { %456 = vmatpush3.bf16.msra.mxu0 %v247_v3  ;;  %457 = vmatprep.mubr.msk.bf16.mxu0 %vm232_vm1, %v478_v2  ;;  %v322_v46 = vld [vmem:[%s567_s3] sm:$0x1] }
  0x17   : > { %466 = vmatpush3.bf16.msra.mxu1 %v247_v3  ;;  %461 = vmatprep.mubr.msk.bf16.mxu1 %vm232_vm1, %v480_v5  ;;  %v338_v49 = vld [vmem:[%s568_s4] sm:$0x1] }
  0x19   : > { %458 = vmatmul.mubr.msk.bf16.vlgmr.msra.gmra.mrb[0].mxu0 %vm232_vm1, %v479_v4 }
  0x1a   : > { %462 = vmatmul.mubr.msk.bf16.vlgmr.msra.gmra.mrb[0].mxu1 %vm232_vm1, %v481_v6 }
  0xec   : > { %v459_v7 = vpop.f32.mrb[0].mxu0 }
  0xed   : > { %316 = vst [vmem:[%s530_s25 + $0x10] sm:$0xff] %v459_v7  ;;  %v283_v8 = vpop.f32.mrb[1].mxu0  ;;  %v463_v9 = vpop.f32.mrb[0].mxu1  ;;  %v341_v18 = vmul.f32 %v459_v7, %v459_v7 }
  0xee   : > { %314 = vst [vmem:[%s530_s25] sm:$0xff] %v283_v8  ;;  %v460_v10 = vpop.f32.mrb[2].mxu0  ;;  %320 = vst [vmem:[%s530_s25 + $0x30] sm:$0xff] %v463_v9  ;;  %v299_v11 = vpop.f32.mrb[1].mxu1  ;;  %v339_v14 = vmul.f32 %v283_v8, %v283_v8  ;;  %v345_v30 = vmul.f32 %v463_v9, %v463_v9 }
  0xef   : > { %317 = vst [vmem:[%s530_s25 + $0x18] sm:$0xff] %v460_v10  ;;  %v286_v12 = vpop.f32.mrb[3].mxu0  ;;  %318 = vst [vmem:[%s530_s25 + $0x20] sm:$0xff] %v299_v11  ;;  %v464_v13 = vpop.f32.mrb[2].mxu1  ;;  %v342_v21 = vmul.f32 %v460_v10, %v460_v10  ;;  %v343_v24 = vmul.f32 %v299_v11, %v299_v11 }
  0xf0   : > { %315 = vst [vmem:[%s530_s25 + $0x8] sm:$0xff] %v286_v12  ;;  %v323_v15 = vadd.f32 %v286_v12, %v283_v8  ;;  %v340_v16 = vmul.f32 %v286_v12, %v286_v12  ;;  %321 = vst [vmem:[%s530_s25 + $0x38] sm:$0xff] %v464_v13  ;;  %v302_v17 = vpop.f32.mrb[3].mxu1  ;;  %v346_v33 = vmul.f32 %v464_v13, %v464_v13 }
  0xf1   : > { %319 = vst [vmem:[%s530_s25 + $0x28] sm:$0xff] %v302_v17  ;;  %v344_v29 = vmul.f32 %v302_v17, %v302_v17 }
  0xf2   : > { %v324_v19 = vadd.f32 %v459_v7, %v323_v15  ;;  %v347_v20 = vadd.f32 %v340_v16, %v339_v14 }
  0xf4   : > { %v348_v22 = vadd.f32 %v347_v20, %v341_v18  ;;  %v325_v23 = vadd.f32 %v460_v10, %v324_v19 }
  0xf6   : > { %v326_v25 = vadd.f32 %v325_v23, %v299_v11  ;;  %v349_v26 = vadd.f32 %v348_v22, %v342_v21 }
  0xf8   : > { %v350_v27 = vadd.f32 %v349_v26, %v343_v24  ;;  %v327_v28 = vadd.f32 %v326_v25, %v302_v17 }
  0xfa   : > { %v328_v31 = vadd.f32 %v463_v9, %v327_v28  ;;  %v351_v32 = vadd.f32 %v350_v27, %v344_v29 }
  0xfc   : > { %v329_v34 = vadd.f32 %v464_v13, %v328_v31  ;;  %v352_v35 = vadd.f32 %v351_v32, %v345_v30 }
  0xfe   : > { %v330_v36 = vrot.slane %v329_v34, 4  ;;  %v353_v37 = vadd.f32 %v352_v35, %v346_v33 }
 0x100   : > { %v331_v38 = vadd.f32 %v330_v36, %v329_v34  ;;  %v354_v39 = vrot.slane %v353_v37, 4 }
 0x102   : > { %v332_v40 = vrot.slane %v331_v38, 2  ;;  %v355_v41 = vadd.f32 %v354_v39, %v353_v37 }
 0x104   : > { %v333_v42 = vadd.f32 %v332_v40, %v331_v38  ;;  %v356_v43 = vrot.slane %v355_v41, 2 }
 0x106   : > { %v334_v44 = vrot.slane %v333_v42, 1  ;;  %v357_v45 = vadd.f32 %v356_v43, %v355_v41 }
 0x108   : > { %v335_v47 = vadd.f32 %v334_v44, %v333_v42  ;;  %v358_v48 = vrot.slane %v357_v45, 1 }
 0x10a   : > { %v336_v50 = vadd.f32 %v335_v47, %v322_v46  ;;  %v359_v51 = vadd.f32 %v358_v48, %v357_v45 }
 0x10c   : > { %337 = vst [vmem:[%s567_s3] sm:$0x1] %v336_v50  ;;  %v360_v52 = vadd.f32 %v359_v51, %v338_v49 }
 0x10e   : > { %361 = vst [vmem:[%s568_s4] sm:$0x1] %v360_v52 }
 0x10f PF: > { %s15_s15 = sadd.s32 1, %s488_s15  }
 0x110   : > { %p12_p5 = scmp.ge.s32.totalorder %s15_s15, 4  }
 0x112   :  { %14 = sbr.rel (!%p12_p5) target bundleno = 1 (0x1), region = 78 }

// kernel: resnet_basic_block.9
= control target key start
LH: loop header
LB: loop body
LE: loop exit
PB: predicated region body
PF: predicated region fallthrough
CT: control target
= control target key end

     0   :  { %s663_s13 = smov 0   ;;  %s742_s0 = inlined_call_operand.vmem [shape: f32[128,128], index: 0, kind: input, shape index: {}]   ;;  %s743_s1 = inlined_call_operand.vmem [shape: f32[1,128], index: 1, kind: input, shape index: {}]   ;;  %s744_s2 = inlined_call_operand.vmem [shape: f32[1,128], index: 2, kind: input, shape index: {}]   ;;  %s745_s3 = inlined_call_operand.vmem [shape: f32[1,128], index: 3, kind: input, shape index: {}]   ;;  %s746_s4 = inlined_call_operand.vmem [shape: f32[1,128], index: 4, kind: input, shape index: {}]   ;;  %s747_s5 = inlined_call_operand.vmem [shape: f32[128,128], index: 5, kind: input, shape index: {}]   ;;  %s748_s6 = inlined_call_operand.vmem [shape: f32[1,128], index: 6, kind: input, shape index: {}]   ;;  %s749_s7 = inlined_call_operand.vmem [shape: f32[1,128], index: 7, kind: input, shape index: {}]   ;;  %s750_s8 = inlined_call_operand.vmem [shape: f32[1,128], index: 8, kind: input, shape index: {}]   ;;  %s751_s9 = inlined_call_operand.vmem [shape: f32[1,128], index: 9, kind: input, shape index: {}]   ;;  %s752_s10 = inlined_call_operand.vmem [shape: f32[128,128], index: 10, kind: output, shape index: {}]  }
   0x1 LB: > { %s575_s14 = sadd.s32 4294967295, %s606_s13   ;;  %p579_p0 = scmp.ge.s32.totalorder %s606_s13, 1  ;;  %s606_s13 = sphi %s663_s13, %s20_s13  }
   0x2   : > { %p324_p1 = scmp.lt.s32.totalorder %s606_s13, 3 }
   0x4   : > { %p325_p2 = pnand %p579_p0, %p324_p1 }
   0x5   : > { %v393_v0 = vld [vmem:[%s743_s1] sm:$0x1] (!%p325_p2)  ;;  %s580_s23 = sshll.u32 (!%p325_p2), %s575_s14, 3  ;;  %v405_v14 = vlaneseq (!%p325_p2) }
   0x6   : > { %328 = sbr.rel (%p325_p2) target bundleno = 50 (0x32), region = 60  ;;  %v394_v1 = vld [vmem:[%s744_s2] sm:$0x1] (!%p325_p2)  ;;  %v397_v2 = vmul.f32 (!%p325_p2), 0.0078125, %v393_v0  ;;  %p368_p3 = scmp.lt.s32.totalorder (!%p325_p2), %s580_s23, 15 }
   0x7   : > { %v398_v3 = vmul.f32 (!%p325_p2), 0.0078125, %v394_v1  ;;  %v442_v4 = vld [vmem:[%s748_s6] sm:$0x1] (!%p325_p2)  ;;  %v406_v15 = vshrl.u32 (!%p325_p2), %v405_v14, 7 }
   0x8   : > { %v443_v5 = vld [vmem:[%s749_s7] sm:$0x1] (!%p325_p2)  ;;  %v399_v6 = vmul.f32 (!%p325_p2), %v397_v2, %v397_v2  ;;  %v446_v7 = vmul.f32 (!%p325_p2), 0.0078125, %v442_v4 }
   0x9   : > { %v447_v8 = vmul.f32 (!%p325_p2), 0.0078125, %v443_v5  ;;  %v395_v16 = vld [vmem:[%s745_s3] sm:$0x1] (!%p325_p2)  ;;  %v407_v17 = vsub.s32 (!%p325_p2), 0, %v406_v15 }
   0xa   : > { %v400_v9 = vsub.f32 (!%p325_p2), %v398_v3, %v399_v6  ;;  %v448_v10 = vmul.f32 (!%p325_p2), %v446_v7, %v446_v7  ;;  %v444_v19 = vld [vmem:[%s750_s8] sm:$0x1] (!%p325_p2) }
   0xb   : > { %v396_v20 = vld [vmem:[%s746_s4] sm:$0x1] (!%p325_p2) }
   0xc   : > { %v401_v11 = vadd.f32 (!%p325_p2), 1e-05, %v400_v9  ;;  %v449_v12 = vsub.f32 (!%p325_p2), %v447_v8, %v448_v10  ;;  %v445_v24 = vld [vmem:[%s751_s9] sm:$0x1] (!%p325_p2) }
   0xd   : > { %s754_s23 = smov (!%p368_p3, %s580_s23), 15 }
   0xe   : > { %596 = vrsqrt.f32 %v401_v11  ;;  %v450_v13 = vadd.f32 1e-05, %v449_v12  ;;  %s683_s24 = sshll.u32 %s754_s23, 3 }
   0xf   : > { %s692_s29 = scalar_lea.vmem %s742_s0, %s683_s24  ;;  %s701_s15 = scalar_lea.vmem %s747_s5, %s683_s24 }
  0x10   : > { %598 = vrsqrt.f32 %v450_v13  ;;  %v385_v23 = vld [vmem:[%s692_s29] sm:$0xff]  ;;  %v386_v25 = vld [vmem:[%s692_s29 + $0x8] sm:$0xff]  ;;  %v387_v29 = vld [vmem:[%s692_s29 + $0x10] sm:$0xff]  ;;  %s383_s22 = scalar_lea.vmem %s752_s10, %s683_s24 }
  0x11   : > { %v388_v30 = vld [vmem:[%s692_s29 + $0x18] sm:$0xff]  ;;  %v389_v31 = vld [vmem:[%s692_s29 + $0x20] sm:$0xff]  ;;  %v435_v33 = vld [vmem:[%s701_s15 + $0x8] sm:$0xff] }
  0x12   : > { %v434_v32 = vld [vmem:[%s701_s15] sm:$0xff]  ;;  %v436_v34 = vld [vmem:[%s701_s15 + $0x10] sm:$0xff]  ;;  %v437_v39 = vld [vmem:[%s701_s15 + $0x18] sm:$0xff] }
  0x13   : > { %v438_v40 = vld [vmem:[%s701_s15 + $0x20] sm:$0xff]  ;;  %v390_v41 = vld [vmem:[%s692_s29 + $0x28] sm:$0xff]  ;;  %v391_v59 = vld [vmem:[%s692_s29 + $0x30] sm:$0xff] }
  0x14   : > { %v439_v50 = vld [vmem:[%s701_s15 + $0x28] sm:$0xff]  ;;  %v440_v60 = vld [vmem:[%s701_s15 + $0x30] sm:$0xff]  ;;  %v392_v13 = vld [vmem:[%s692_s29 + $0x38] sm:$0xff] }
  0x18   : > { %v597_v18 = vpop.eup %596 }
  0x19   : > { %v403_v21 = vmul.f32 %v597_v18, %v395_v16  ;;  %v441_v18 = vld [vmem:[%s701_s15 + $0x38] sm:$0xff] }
  0x1a   : > { %v599_v22 = vpop.eup %598 }
  0x1b   : > { %v711_v26 = vrot.slane %v403_v21, %v407_v17  ;;  %v418_v27 = vmul.f32 %v403_v21, %v397_v2  ;;  %v452_v28 = vmul.f32 %v599_v22, %v444_v19 }
  0x1d   : > { %v410_v35 = vmul.f32 %v711_v26, %v385_v23  ;;  %v419_v36 = vsub.f32 %v396_v20, %v418_v27  ;;  %v457_v37 = vrot.slane %v452_v28, %v407_v17  ;;  %v467_v38 = vmul.f32 %v452_v28, %v446_v7 }
  0x1e   : > { %v411_v42 = vmul.f32 %v711_v26, %v386_v25  ;;  %v412_v43 = vmul.f32 %v711_v26, %v387_v29  ;;  %v413_v44 = vmul.f32 %v711_v26, %v388_v30  ;;  %v414_v45 = vmul.f32 %v711_v26, %v389_v31 }
  0x1f   : > { %v424_v46 = vrot.slane %v419_v36, %v407_v17  ;;  %v459_v47 = vmul.f32 %v457_v37, %v434_v32  ;;  %v468_v48 = vsub.f32 %v445_v24, %v467_v38  ;;  %v460_v49 = vmul.f32 %v457_v37, %v435_v33 }
  0x20   : > { %v461_v51 = vmul.f32 %v457_v37, %v436_v34  ;;  %v462_v52 = vmul.f32 %v457_v37, %v437_v39  ;;  %v463_v53 = vmul.f32 %v457_v37, %v438_v40  ;;  %v415_v54 = vmul.f32 %v711_v26, %v390_v41 }
  0x21   : > { %v426_v55 = vadd.f32 %v424_v46, %v410_v35  ;;  %v473_v56 = vrot.slane %v468_v48, %v407_v17  ;;  %v427_v57 = vadd.f32 %v424_v46, %v411_v42  ;;  %v428_v58 = vadd.f32 %v424_v46, %v412_v43 }
  0x22   : > { %v429_v61 = vadd.f32 %v424_v46, %v413_v44  ;;  %v430_v62 = vadd.f32 %v424_v46, %v414_v45  ;;  %v431_v63 = vadd.f32 %v424_v46, %v415_v54  ;;  %v464_v0 = vmul.f32 %v457_v37, %v439_v50 }
  0x23   : > { %v475_v1 = vadd.f32 %v473_v56, %v459_v47  ;;  %v476_v2 = vadd.f32 %v473_v56, %v460_v49  ;;  %v477_v3 = vadd.f32 %v473_v56, %v461_v51  ;;  %v478_v4 = vadd.f32 %v473_v56, %v462_v52 }
  0x24   : > { %v479_v5 = vadd.f32 %v473_v56, %v463_v53  ;;  %v480_v6 = vadd.f32 %v473_v56, %v464_v0  ;;  %v416_v7 = vmul.f32 %v711_v26, %v391_v59  ;;  %v465_v8 = vmul.f32 %v457_v37, %v440_v60 }
  0x25   : > { %v483_v9 = vadd.f32 %v475_v1, %v426_v55  ;;  %v484_v10 = vadd.f32 %v476_v2, %v427_v57  ;;  %v485_v11 = vadd.f32 %v477_v3, %v428_v58  ;;  %v486_v12 = vadd.f32 %v478_v4, %v429_v61 }
  0x26   : > { %v487_v14 = vadd.f32 %v479_v5, %v430_v62  ;;  %v488_v15 = vadd.f32 %v480_v6, %v431_v63  ;;  %v432_v16 = vadd.f32 %v424_v46, %v416_v7  ;;  %v481_v17 = vadd.f32 %v473_v56, %v465_v8 }
  0x27   : > { %v491_v19 = vmax.f32 %v483_v9, 0.0  ;;  %v492_v20 = vmax.f32 %v484_v10, 0.0  ;;  %v493_v21 = vmax.f32 %v485_v11, 0.0  ;;  %v494_v22 = vmax.f32 %v486_v12, 0.0 }
  0x28   : > { %v495_v23 = vmax.f32 %v487_v14, 0.0  ;;  %v496_v24 = vmax.f32 %v488_v15, 0.0  ;;  %v489_v25 = vadd.f32 %v481_v17, %v432_v16  ;;  %v417_v27 = vmul.f32 %v711_v26, %v392_v13 }
  0x29   : > { %499 = vst [vmem:[%s383_s22] sm:$0xff] %v491_v19  ;;  %500 = vst [vmem:[%s383_s22 + $0x8] sm:$0xff] %v492_v20  ;;  %v466_v28 = vmul.f32 %v457_v37, %v441_v18 }
  0x2a   : > { %501 = vst [vmem:[%s383_s22 + $0x10] sm:$0xff] %v493_v21  ;;  %502 = vst [vmem:[%s383_s22 + $0x18] sm:$0xff] %v494_v22  ;;  %v497_v29 = vmax.f32 %v489_v25, 0.0  ;;  %v433_v30 = vadd.f32 %v424_v46, %v417_v27 }
  0x2b   : > { %503 = vst [vmem:[%s383_s22 + $0x20] sm:$0xff] %v495_v23  ;;  %504 = vst [vmem:[%s383_s22 + $0x28] sm:$0xff] %v496_v24  ;;  %v482_v31 = vadd.f32 %v473_v56, %v466_v28 }
  0x2c   : > { %505 = vst [vmem:[%s383_s22 + $0x30] sm:$0xff] %v497_v29 }
  0x2d   : > { %v490_v32 = vadd.f32 %v482_v31, %v433_v30 }
  0x2f   : > { %v498_v33 = vmax.f32 %v490_v32, 0.0 }
  0x31   : > { %506 = vst [vmem:[%s383_s22 + $0x38] sm:$0xff] %v498_v33 }
  0x32 PF: > { %s20_s13 = sadd.s32 1, %s606_s13  }
  0x33   : > { %p17_p4 = scmp.ge.s32.totalorder %s20_s13, 4  }
  0x35   :  { %19 = sbr.rel (!%p17_p4) target bundleno = 1 (0x1), region = 93 }

</bundles_post_ra>
